<compile_context>
chip_gen: v7x
topology: tpu7x:2x2x1
jax: 0.10.0
libtpu: 0.0.40
codegen_flags: <defaults>
</compile_context>

<pallas_src>
import functools

import numpy as np
import jax
import jax.numpy as jnp
from jax import lax
from jax.experimental import pallas as pl
from jax.experimental.pallas import tpu as pltpu

CH = 8                       # hidden channels of SM_uint
PAD = 3                      # uniform halo = max dilation used by any conv
MID_DILATIONS = (1, 2, 3)    # conv1 / conv2 / conv3 dilations (E and G use 1)


# ------------------------------- Pallas kernel -------------------------------
def _sm_kernel(Wp, n_units, x_ref, wE_ref, bE_ref, wC_ref, bC_ref,
               wG_ref, bG_ref, m_ref, out_ref, stk_ref):
    """Run all n_units * 5 conv layers for one grid step, activation in VMEM.

    Wrap-around safety of the rolled taps: a tap only needs to be valid at
    interior positions.  With PAD >= max(dilation), |offset| <= PAD*(Wp+1),
    which equals the smallest interior flat index, and the largest interior
    index plus the offset is Hp*Wp - 1 < LB, so interior taps never wrap
    (every non-interior position is re-zeroed by the mask each layer).
    """
    LB = x_ref.shape[-1]
    mask = m_ref[...]                                    # (1, LB) interior mask
    rows = lax.broadcasted_iota(jnp.int32, (CH, 1), 0)   # sublane ids

    def taps_to_scratch(act, d):
        # im2col: write each dilated tap straight into the persistent VMEM
        # scratch (8-row aligned unmasked stores); never hold all 9 taps in
        # vregs at once.
        for t in range(9):
            ky, kx = t // 3, t % 3
            off = (ky - 1) * d * Wp + (kx - 1) * d
            tap = act if off == 0 else pltpu.roll(act, (-off) % LB, axis=1)
            stk_ref[pl.ds(CH * t, CH), :] = tap

    def unit_body(u, carry):
        g, outs = carry                                  # g: (1, LB) unit input

        # ---- E: 1 -> 8, dilation 1.  cin == 1 so no im2col / matmul: nine
        # broadcast multiply-adds on the VPU.
        we = wE_ref[u]                                   # (CH, 9)
        acc = jnp.broadcast_to(bE_ref[u], (CH, LB))      # (CH, LB) bias
        for t in range(9):
            ky, kx = t // 3, t % 3
            off = (ky - 1) * Wp + (kx - 1)
            tap = g if off == 0 else pltpu.roll(g, (-off) % LB, axis=1)
            acc = acc + we[:, t:t + 1] * tap
        act = jnp.maximum(acc, 0.0) * mask               # (CH, LB)

        # ---- conv1/2/3: 8 -> 8, dilations 1/2/3, each followed by residual.
        for l, d in enumerate(MID_DILATIONS):
            w2 = wC_ref[3 * u + l]                       # (CH, 9*CH)
            b2 = bC_ref[3 * u + l]                       # (CH, 1)
            taps_to_scratch(act, d)
            # small (8,72) operand on the left; (72,LB) im2col streams from VMEM
            y = jnp.dot(w2, stk_ref[...],
                        preferred_element_type=jnp.float32) + b2
            act = (jnp.maximum(y, 0.0) + act) * mask

        # ---- G: 8 -> 1, dilation 1.  Weight rows 1..7 are exact zeros
        # (identical MXU cost for any M <= 8); epilogue only touches row 0.
        taps_to_scratch(act, 1)
        yg = jnp.dot(wG_ref[u], stk_ref[...],
                     preferred_element_type=jnp.float32)[0:1, :]     # (1, LB)
        g_new = jnp.maximum(yg + bG_ref[u], 0.0) * mask              # (1, LB)

        # Deposit this unit's output into sublane u of the merged output
        # (single dense (CH, LB) store / output DMA at the end of the step).
        outs = jnp.where(rows == u, jnp.broadcast_to(g_new, (CH, LB)), outs)
        return g_new, outs

    g0 = x_ref[0]                                        # (1, LB), halo-zeroed
    outs0 = jnp.zeros((CH, LB), jnp.float32)
    _, outs = lax.fori_loop(0, n_units, unit_body, (g0, outs0))
    out_ref[0] = outs


# --------------------------------- wrapper -----------------------------------
def _pack_params(unit_params):
    """HWIO conv params -> flat per-layer operands matching the kernel layout.

    8->8 / 8->1 weight columns are ordered (co, (ky, kx, ci)) so contraction
    with the tap-major im2col scratch reproduces the conv exactly.
    """
    wE, bE, wC, bC, wG, bG = [], [], [], [], [], []
    for p in unit_params:
        wE.append(jnp.transpose(p["E_w"], (3, 0, 1, 2)).reshape(CH, 9))
        bE.append(p["E_b"].reshape(CH, 1))
        for name in ("c1", "c2", "c3"):
            wC.append(jnp.transpose(p[f"{name}_w"], (3, 0, 1, 2))
                      .reshape(CH, 9 * CH))
            bC.append(p[f"{name}_b"].reshape(CH, 1))
        wg = jnp.transpose(p["G_w"], (3, 0, 1, 2)).reshape(1, 9 * CH)
        wG.append(jnp.pad(wg, ((0, CH - 1), (0, 0))))    # rows 1..7 exactly 0
        bG.append(p["G_b"].reshape(1, 1))
    return (jnp.stack(wE), jnp.stack(bE), jnp.stack(wC), jnp.stack(bC),
            jnp.stack(wG), jnp.stack(bG))


def sm_forward(x_nchw, unit_params, images_per_step=1):
    """x_nchw: (N,1,H,W) f32; unit_params: list of SM_uint param dicts.
    Returns a tuple of len(unit_params) arrays (N,1,H,W), one per unit.

    images_per_step: lane-batch B images per grid step (for single-TC
    v5e/v6e).  Default 1 keeps N grid steps so v7x's two TensorCores both
    get work via dimension_semantics=("parallel",).
    """
    N, C, H, W = x_nchw.shape
    assert C == 1
    n_units = len(unit_params)
    assert n_units <= CH
    assert PAD >= max(MID_DILATIONS)   # interior taps never wrap (see kernel)
    B = images_per_step
    assert N % B == 0
    S = N // B
    Hp, Wp = H + 2 * PAD, W + 2 * PAD
    L = ((Hp * Wp + 127) // 128) * 128          # per-image lane-dense length
    LB = B * L

    wE, bE, wC, bC, wG, bG = _pack_params(unit_params)

    # Single halo pad of the input -> lane-dense flat layout, B images/step.
    xp = jnp.pad(x_nchw[:, 0], ((0, 0), (PAD, PAD), (PAD, PAD)))
    xflat = jnp.pad(xp.reshape(N, Hp * Wp), ((0, 0), (0, L - Hp * Wp)))
    xflat = xflat.reshape(S, 1, LB)

    # Interior mask (compile-time constant), tiled per image segment.
    pos = np.arange(L)
    r, c = pos // Wp, pos % Wp
    inside = ((r >= PAD) & (r < PAD + H) & (c >= PAD) & (c < PAD + W))
    mask = jnp.asarray(np.tile(inside.astype(np.float32), B)[None, :])

    kernel = functools.partial(_sm_kernel, Wp, n_units)

    out = pl.pallas_call(
        kernel,
        out_shape=jax.ShapeDtypeStruct((S, CH, LB), jnp.float32),
        grid=(S,),
        in_specs=[
            pl.BlockSpec((1, 1, LB), lambda s: (s, 0, 0)),
            pl.BlockSpec(wE.shape, lambda s: (0, 0, 0)),
            pl.BlockSpec(bE.shape, lambda s: (0, 0, 0)),
            pl.BlockSpec(wC.shape, lambda s: (0, 0, 0)),
            pl.BlockSpec(bC.shape, lambda s: (0, 0, 0)),
            pl.BlockSpec(wG.shape, lambda s: (0, 0, 0)),
            pl.BlockSpec(bG.shape, lambda s: (0, 0, 0)),
            pl.BlockSpec((1, LB), lambda s: (0, 0)),
        ],
        out_specs=pl.BlockSpec((1, CH, LB), lambda s: (s, 0, 0)),
        scratch_shapes=[pltpu.VMEM((9 * CH, LB), jnp.float32)],  # im2col scratch
        compiler_params=pltpu.CompilerParams(
            dimension_semantics=("parallel",)),
    )(xflat, wE, bE, wC, bC, wG, bG, mask)

    # Merged (S, CH, LB) output -> per-unit (N, 1, H, W).
    def unflat(u):
        o = out[:, u, :].reshape(N, L)[:, :Hp * Wp].reshape(N, Hp, Wp)
        return o[:, PAD:PAD + H, PAD:PAD + W][:, None]
    return tuple(unflat(u) for u in range(n_units))


# ----------------------------- reference (plain JAX) --------------------------
def _conv_ref(x, w, b, d):
    y = lax.conv_general_dilated(
        x, w, window_strides=(1, 1), padding=[(d, d), (d, d)],
        rhs_dilation=(d, d), dimension_numbers=("NHWC", "HWIO", "NHWC"))
    return jnp.maximum(y + b[None, None, None, :], 0.0)


def _sm_uint_ref(x, p):                       # x: (N,H,W,1) NHWC
    out = _conv_ref(x, p["E_w"], p["E_b"], 1)
    out = _conv_ref(out, p["c1_w"], p["c1_b"], 1) + out
    out = _conv_ref(out, p["c2_w"], p["c2_b"], 2) + out
    out = _conv_ref(out, p["c3_w"], p["c3_b"], 3) + out
    out = _conv_ref(out, p["G_w"], p["G_b"], 1)
    return out


def sm_ref(x_nchw, unit_params):
    x = jnp.transpose(x_nchw, (0, 2, 3, 1))   # NHWC
    outs = []
    for p in unit_params:
        x = _sm_uint_ref(x, p)
        outs.append(jnp.transpose(x, (0, 3, 1, 2)))
    return tuple(outs)


# ----------------------------- deterministic params ---------------------------
def init_unit_params(key):
    """Conv2d-style init (uniform +/- 1/sqrt(fan_in)), HWIO layout."""
    shapes = {"E": (1, CH), "c1": (CH, CH), "c2": (CH, CH),
              "c3": (CH, CH), "G": (CH, 1)}
    params = {}
    for name, (cin, cout) in shapes.items():
        key, kw, kb = jax.random.split(key, 3)
        bound = 1.0 / float(np.sqrt(cin * 9.0))
        params[f"{name}_w"] = jax.random.uniform(
            kw, (3, 3, cin, cout), jnp.float32, -bound, bound)
        params[f"{name}_b"] = jax.random.uniform(
            kb, (cout,), jnp.float32, -bound, bound)
    return params


if __name__ == "__main__":
    key = jax.random.PRNGKey(0)
    kx, kp = jax.random.split(key)

    # PyTorch SM input: (N, 1, H, W) = (2, 1, 16, 16)
    x = jax.random.normal(kx, (2, 1, 16, 16), jnp.float32)
    unit_params = [init_unit_params(k) for k in jax.random.split(kp, 7)]

    refs = jax.block_until_ready(sm_ref(x, unit_params))

    # B=1: two "parallel" grid steps (one per v7x TensorCore).
    # B=2: lane-batched single step (preferred on single-TC v5e/v6e).
    for B in (1, 2):
        fwd = jax.jit(functools.partial(sm_forward, images_per_step=B))
        outs = jax.block_until_ready(fwd(x, unit_params))
        assert len(outs) == 7
        for i, (o, r) in enumerate(zip(outs, refs)):
            assert o.shape == (2, 1, 16, 16), (B, i, o.shape)
            err = float(jnp.max(jnp.abs(o - r)))
            assert jnp.allclose(o, r, rtol=1e-4, atol=1e-4), (B, i, err)
    print("KERNEL_OK")
</pallas_src>

<mosaic_0001>
module attributes {stable_mosaic.version = 11 : i64} {
  func.func @_sm_kernel(%arg0: i32, %arg1: memref<1x1x512xf32, #tpu.memory_space<vmem>>, %arg2: memref<7x8x9xf32, #tpu.memory_space<vmem>>, %arg3: memref<7x8x1xf32, #tpu.memory_space<vmem>>, %arg4: memref<21x8x72xf32, #tpu.memory_space<vmem>>, %arg5: memref<21x8x1xf32, #tpu.memory_space<vmem>>, %arg6: memref<7x8x72xf32, #tpu.memory_space<vmem>>, %arg7: memref<7x1x1xf32, #tpu.memory_space<vmem>>, %arg8: memref<1x512xf32, #tpu.memory_space<vmem>>, %arg9: memref<1x8x512xf32, #tpu.memory_space<vmem>>, %arg10: memref<72x512xf32, #tpu.memory_space<vmem>>) attributes {dimension_semantics = [#tpu.dimension_semantics<parallel>], iteration_bounds = array<i64: 2>, scalar_prefetch = 0 : i64, scratch_operands = 1 : i64, tpu.core_type = #tpu.core_type<tc>, window_params = [{transform_indices = @transform_0, window_bounds = array<i64: 1, 1, 512>}, {pipeline_mode = #tpu.pipeline_mode<synchronous>, transform_indices = @transform_1, window_bounds = array<i64: 7, 8, 9>}, {pipeline_mode = #tpu.pipeline_mode<synchronous>, transform_indices = @transform_2, window_bounds = array<i64: 7, 8, 1>}, {pipeline_mode = #tpu.pipeline_mode<synchronous>, transform_indices = @transform_3, window_bounds = array<i64: 21, 8, 72>}, {pipeline_mode = #tpu.pipeline_mode<synchronous>, transform_indices = @transform_4, window_bounds = array<i64: 21, 8, 1>}, {pipeline_mode = #tpu.pipeline_mode<synchronous>, transform_indices = @transform_5, window_bounds = array<i64: 7, 8, 72>}, {pipeline_mode = #tpu.pipeline_mode<synchronous>, transform_indices = @transform_6, window_bounds = array<i64: 7, 1, 1>}, {pipeline_mode = #tpu.pipeline_mode<synchronous>, transform_indices = @transform_7, window_bounds = array<i64: 1, 512>}, {transform_indices = @transform_8, window_bounds = array<i64: 1, 8, 512>}]} {
    %c0 = arith.constant 0 : index
    %c0_0 = arith.constant 0 : index
    %0 = vector.load %arg8[%c0, %c0_0] : memref<1x512xf32, #tpu.memory_space<vmem>>, vector<1x512xf32>
    %1 = tpu.iota {dimensions = array<i32: 0>} : vector<8x1xi32>
    %c0_1 = arith.constant 0 : index
    %c0_2 = arith.constant 0 : index
    %c0_3 = arith.constant 0 : index
    %2 = vector.load %arg1[%c0_1, %c0_2, %c0_3] : memref<1x1x512xf32, #tpu.memory_space<vmem>>, vector<1x1x512xf32>
    %3 = vector.shape_cast %2 : vector<1x1x512xf32> to vector<1x512xf32>
    %cst = arith.constant 0.000000e+00 : f32
    %4 = vector.broadcast %cst : f32 to vector<8x512xf32>
    %c0_i32 = arith.constant 0 : i32
    %c7_i32 = arith.constant 7 : i32
    %5 = arith.addi %c0_i32, %c7_i32 : i32
    %c1_i32 = arith.constant 1 : i32
    %6:2 = scf.for %arg11 = %c0_i32 to %5 step %c1_i32 iter_args(%arg12 = %3, %arg13 = %4) -> (vector<1x512xf32>, vector<8x512xf32>)  : i32 {
      %10 = arith.index_cast %arg11 : i32 to index
      %c0_8 = arith.constant 0 : index
      %c0_9 = arith.constant 0 : index
      %11 = vector.load %arg2[%10, %c0_8, %c0_9] : memref<7x8x9xf32, #tpu.memory_space<vmem>>, vector<1x8x9xf32>
      %12 = vector.shape_cast %11 : vector<1x8x9xf32> to vector<8x9xf32>
      %13 = arith.index_cast %arg11 : i32 to index
      %c0_10 = arith.constant 0 : index
      %c0_11 = arith.constant 0 : index
      %14 = vector.load %arg3[%13, %c0_10, %c0_11] : memref<7x8x1xf32, #tpu.memory_space<vmem>>, vector<1x8x1xf32>
      %15 = vector.shape_cast %14 : vector<1x8x1xf32> to vector<8x1xf32>
      %16 = vector.shape_cast %15 : vector<8x1xf32> to vector<8x1xf32>
      %17 = vector.broadcast %16 : vector<8x1xf32> to vector<8x512xf32>
      %c23_i32 = arith.constant 23 : i32
      %18 = tpu.dynamic_rotate %arg12 by %c23_i32 dim 1 : vector<1x512xf32>, i32 -> vector<1x512xf32>
      %19 = vector.extract_strided_slice %12 {offsets = [0, 0], sizes = [8, 1], strides = [1, 1]} : vector<8x9xf32> to vector<8x1xf32>
      %20 = vector.broadcast %19 : vector<8x1xf32> to vector<8x512xf32>
      %21 = vector.broadcast %18 : vector<1x512xf32> to vector<8x512xf32>
      %22 = arith.mulf %20, %21 : vector<8x512xf32>
      %23 = arith.addf %17, %22 : vector<8x512xf32>
      %c22_i32 = arith.constant 22 : i32
      %24 = tpu.dynamic_rotate %arg12 by %c22_i32 dim 1 : vector<1x512xf32>, i32 -> vector<1x512xf32>
      %25 = vector.extract_strided_slice %12 {offsets = [0, 1], sizes = [8, 1], strides = [1, 1]} : vector<8x9xf32> to vector<8x1xf32>
      %26 = vector.broadcast %25 : vector<8x1xf32> to vector<8x512xf32>
      %27 = vector.broadcast %24 : vector<1x512xf32> to vector<8x512xf32>
      %28 = arith.mulf %26, %27 : vector<8x512xf32>
      %29 = arith.addf %23, %28 : vector<8x512xf32>
      %c21_i32 = arith.constant 21 : i32
      %30 = tpu.dynamic_rotate %arg12 by %c21_i32 dim 1 : vector<1x512xf32>, i32 -> vector<1x512xf32>
      %31 = vector.extract_strided_slice %12 {offsets = [0, 2], sizes = [8, 1], strides = [1, 1]} : vector<8x9xf32> to vector<8x1xf32>
      %32 = vector.broadcast %31 : vector<8x1xf32> to vector<8x512xf32>
      %33 = vector.broadcast %30 : vector<1x512xf32> to vector<8x512xf32>
      %34 = arith.mulf %32, %33 : vector<8x512xf32>
      %35 = arith.addf %29, %34 : vector<8x512xf32>
      %c1_i32_12 = arith.constant 1 : i32
      %36 = tpu.dynamic_rotate %arg12 by %c1_i32_12 dim 1 : vector<1x512xf32>, i32 -> vector<1x512xf32>
      %37 = vector.extract_strided_slice %12 {offsets = [0, 3], sizes = [8, 1], strides = [1, 1]} : vector<8x9xf32> to vector<8x1xf32>
      %38 = vector.broadcast %37 : vector<8x1xf32> to vector<8x512xf32>
      %39 = vector.broadcast %36 : vector<1x512xf32> to vector<8x512xf32>
      %40 = arith.mulf %38, %39 : vector<8x512xf32>
      %41 = arith.addf %35, %40 : vector<8x512xf32>
      %42 = vector.extract_strided_slice %12 {offsets = [0, 4], sizes = [8, 1], strides = [1, 1]} : vector<8x9xf32> to vector<8x1xf32>
      %43 = vector.broadcast %42 : vector<8x1xf32> to vector<8x512xf32>
      %44 = vector.broadcast %arg12 : vector<1x512xf32> to vector<8x512xf32>
      %45 = arith.mulf %43, %44 : vector<8x512xf32>
      %46 = arith.addf %41, %45 : vector<8x512xf32>
      %c511_i32 = arith.constant 511 : i32
      %47 = tpu.dynamic_rotate %arg12 by %c511_i32 dim 1 : vector<1x512xf32>, i32 -> vector<1x512xf32>
      %48 = vector.extract_strided_slice %12 {offsets = [0, 5], sizes = [8, 1], strides = [1, 1]} : vector<8x9xf32> to vector<8x1xf32>
      %49 = vector.broadcast %48 : vector<8x1xf32> to vector<8x512xf32>
      %50 = vector.broadcast %47 : vector<1x512xf32> to vector<8x512xf32>
      %51 = arith.mulf %49, %50 : vector<8x512xf32>
      %52 = arith.addf %46, %51 : vector<8x512xf32>
      %c491_i32 = arith.constant 491 : i32
      %53 = tpu.dynamic_rotate %arg12 by %c491_i32 dim 1 : vector<1x512xf32>, i32 -> vector<1x512xf32>
      %54 = vector.extract_strided_slice %12 {offsets = [0, 6], sizes = [8, 1], strides = [1, 1]} : vector<8x9xf32> to vector<8x1xf32>
      %55 = vector.broadcast %54 : vector<8x1xf32> to vector<8x512xf32>
      %56 = vector.broadcast %53 : vector<1x512xf32> to vector<8x512xf32>
      %57 = arith.mulf %55, %56 : vector<8x512xf32>
      %58 = arith.addf %52, %57 : vector<8x512xf32>
      %c490_i32 = arith.constant 490 : i32
      %59 = tpu.dynamic_rotate %arg12 by %c490_i32 dim 1 : vector<1x512xf32>, i32 -> vector<1x512xf32>
      %60 = vector.extract_strided_slice %12 {offsets = [0, 7], sizes = [8, 1], strides = [1, 1]} : vector<8x9xf32> to vector<8x1xf32>
      %61 = vector.broadcast %60 : vector<8x1xf32> to vector<8x512xf32>
      %62 = vector.broadcast %59 : vector<1x512xf32> to vector<8x512xf32>
      %63 = arith.mulf %61, %62 : vector<8x512xf32>
      %64 = arith.addf %58, %63 : vector<8x512xf32>
      %c489_i32 = arith.constant 489 : i32
      %65 = tpu.dynamic_rotate %arg12 by %c489_i32 dim 1 : vector<1x512xf32>, i32 -> vector<1x512xf32>
      %66 = vector.extract_strided_slice %12 {offsets = [0, 8], sizes = [8, 1], strides = [1, 1]} : vector<8x9xf32> to vector<8x1xf32>
      %67 = vector.broadcast %66 : vector<8x1xf32> to vector<8x512xf32>
      %68 = vector.broadcast %65 : vector<1x512xf32> to vector<8x512xf32>
      %69 = arith.mulf %67, %68 : vector<8x512xf32>
      %70 = arith.addf %64, %69 : vector<8x512xf32>
      %cst_13 = arith.constant 0.000000e+00 : f32
      %71 = vector.broadcast %cst_13 : f32 to vector<8x512xf32>
      %72 = arith.maximumf %70, %71 : vector<8x512xf32>
      %73 = vector.broadcast %0 : vector<1x512xf32> to vector<8x512xf32>
      %74 = arith.mulf %72, %73 : vector<8x512xf32>
      %c3_i32 = arith.constant 3 : i32
      %75 = arith.muli %c3_i32, %arg11 : i32
      %c0_i32_14 = arith.constant 0 : i32
      %76 = arith.addi %75, %c0_i32_14 : i32
      %77 = arith.index_cast %76 : i32 to index
      %c0_15 = arith.constant 0 : index
      %c0_16 = arith.constant 0 : index
      %78 = vector.load %arg4[%77, %c0_15, %c0_16] : memref<21x8x72xf32, #tpu.memory_space<vmem>>, vector<1x8x72xf32>
      %79 = vector.shape_cast %78 : vector<1x8x72xf32> to vector<8x72xf32>
      %c3_i32_17 = arith.constant 3 : i32
      %80 = arith.muli %c3_i32_17, %arg11 : i32
      %c0_i32_18 = arith.constant 0 : i32
      %81 = arith.addi %80, %c0_i32_18 : i32
      %82 = arith.index_cast %81 : i32 to index
      %c0_19 = arith.constant 0 : index
      %c0_20 = arith.constant 0 : index
      %83 = vector.load %arg5[%82, %c0_19, %c0_20] : memref<21x8x1xf32, #tpu.memory_space<vmem>>, vector<1x8x1xf32>
      %84 = vector.shape_cast %83 : vector<1x8x1xf32> to vector<8x1xf32>
      %c23_i32_21 = arith.constant 23 : i32
      %85 = tpu.dynamic_rotate %74 by %c23_i32_21 dim 1 : vector<8x512xf32>, i32 -> vector<8x512xf32>
      %c0_22 = arith.constant 0 : index
      %c0_23 = arith.constant 0 : index
      %86 = vector.load %arg10[%c0_22, %c0_23] : memref<72x512xf32, #tpu.memory_space<vmem>>, vector<8x512xf32>
      tpu.vector_store %arg10[%c0_22, %c0_23], %85 {strides = array<i32>} : memref<72x512xf32, #tpu.memory_space<vmem>>, vector<8x512xf32>,
      %c22_i32_24 = arith.constant 22 : i32
      %87 = tpu.dynamic_rotate %74 by %c22_i32_24 dim 1 : vector<8x512xf32>, i32 -> vector<8x512xf32>
      %c8 = arith.constant 8 : index
      %c0_25 = arith.constant 0 : index
      %88 = vector.load %arg10[%c8, %c0_25] : memref<72x512xf32, #tpu.memory_space<vmem>>, vector<8x512xf32>
      tpu.vector_store %arg10[%c8, %c0_25], %87 {strides = array<i32>} : memref<72x512xf32, #tpu.memory_space<vmem>>, vector<8x512xf32>,
      %c21_i32_26 = arith.constant 21 : i32
      %89 = tpu.dynamic_rotate %74 by %c21_i32_26 dim 1 : vector<8x512xf32>, i32 -> vector<8x512xf32>
      %c16 = arith.constant 16 : index
      %c0_27 = arith.constant 0 : index
      %90 = vector.load %arg10[%c16, %c0_27] : memref<72x512xf32, #tpu.memory_space<vmem>>, vector<8x512xf32>
      tpu.vector_store %arg10[%c16, %c0_27], %89 {strides = array<i32>} : memref<72x512xf32, #tpu.memory_space<vmem>>, vector<8x512xf32>,
      %c1_i32_28 = arith.constant 1 : i32
      %91 = tpu.dynamic_rotate %74 by %c1_i32_28 dim 1 : vector<8x512xf32>, i32 -> vector<8x512xf32>
      %c24 = arith.constant 24 : index
      %c0_29 = arith.constant 0 : index
      %92 = vector.load %arg10[%c24, %c0_29] : memref<72x512xf32, #tpu.memory_space<vmem>>, vector<8x512xf32>
      tpu.vector_store %arg10[%c24, %c0_29], %91 {strides = array<i32>} : memref<72x512xf32, #tpu.memory_space<vmem>>, vector<8x512xf32>,
      %c32 = arith.constant 32 : index
      %c0_30 = arith.constant 0 : index
      %93 = vector.load %arg10[%c32, %c0_30] : memref<72x512xf32, #tpu.memory_space<vmem>>, vector<8x512xf32>
      tpu.vector_store %arg10[%c32, %c0_30], %74 {strides = array<i32>} : memref<72x512xf32, #tpu.memory_space<vmem>>, vector<8x512xf32>,
      %c511_i32_31 = arith.constant 511 : i32
      %94 = tpu.dynamic_rotate %74 by %c511_i32_31 dim 1 : vector<8x512xf32>, i32 -> vector<8x512xf32>
      %c40 = arith.constant 40 : index
      %c0_32 = arith.constant 0 : index
      %95 = vector.load %arg10[%c40, %c0_32] : memref<72x512xf32, #tpu.memory_space<vmem>>, vector<8x512xf32>
      tpu.vector_store %arg10[%c40, %c0_32], %94 {strides = array<i32>} : memref<72x512xf32, #tpu.memory_space<vmem>>, vector<8x512xf32>,
      %c491_i32_33 = arith.constant 491 : i32
      %96 = tpu.dynamic_rotate %74 by %c491_i32_33 dim 1 : vector<8x512xf32>, i32 -> vector<8x512xf32>
      %c48 = arith.constant 48 : index
      %c0_34 = arith.constant 0 : index
      %97 = vector.load %arg10[%c48, %c0_34] : memref<72x512xf32, #tpu.memory_space<vmem>>, vector<8x512xf32>
      tpu.vector_store %arg10[%c48, %c0_34], %96 {strides = array<i32>} : memref<72x512xf32, #tpu.memory_space<vmem>>, vector<8x512xf32>,
      %c490_i32_35 = arith.constant 490 : i32
      %98 = tpu.dynamic_rotate %74 by %c490_i32_35 dim 1 : vector<8x512xf32>, i32 -> vector<8x512xf32>
      %c56 = arith.constant 56 : index
      %c0_36 = arith.constant 0 : index
      %99 = vector.load %arg10[%c56, %c0_36] : memref<72x512xf32, #tpu.memory_space<vmem>>, vector<8x512xf32>
      tpu.vector_store %arg10[%c56, %c0_36], %98 {strides = array<i32>} : memref<72x512xf32, #tpu.memory_space<vmem>>, vector<8x512xf32>,
      %c489_i32_37 = arith.constant 489 : i32
      %100 = tpu.dynamic_rotate %74 by %c489_i32_37 dim 1 : vector<8x512xf32>, i32 -> vector<8x512xf32>
      %c64 = arith.constant 64 : index
      %c0_38 = arith.constant 0 : index
      %101 = vector.load %arg10[%c64, %c0_38] : memref<72x512xf32, #tpu.memory_space<vmem>>, vector<8x512xf32>
      tpu.vector_store %arg10[%c64, %c0_38], %100 {strides = array<i32>} : memref<72x512xf32, #tpu.memory_space<vmem>>, vector<8x512xf32>,
      %c0_39 = arith.constant 0 : index
      %c0_40 = arith.constant 0 : index
      %102 = vector.load %arg10[%c0_39, %c0_40] : memref<72x512xf32, #tpu.memory_space<vmem>>, vector<72x512xf32>
      %cst_41 = arith.constant dense<0.000000e+00> : vector<8x512xf32>
      %103 = tpu.matmul %79, %102, %cst_41 {dimension_numbers = #tpu.dot_dimension_numbers<[1], [0], [0], [1], [0, 0, 1, 1], [], []>} : vector<8x72xf32>, vector<72x512xf32>, vector<8x512xf32> -> vector<8x512xf32>
      %104 = vector.broadcast %84 : vector<8x1xf32> to vector<8x512xf32>
      %105 = arith.addf %103, %104 : vector<8x512xf32>
      %cst_42 = arith.constant 0.000000e+00 : f32
      %106 = vector.broadcast %cst_42 : f32 to vector<8x512xf32>
      %107 = arith.maximumf %105, %106 : vector<8x512xf32>
      %108 = arith.addf %107, %74 : vector<8x512xf32>
      %109 = vector.broadcast %0 : vector<1x512xf32> to vector<8x512xf32>
      %110 = arith.mulf %108, %109 : vector<8x512xf32>
      %c3_i32_43 = arith.constant 3 : i32
      %111 = arith.muli %c3_i32_43, %arg11 : i32
      %c1_i32_44 = arith.constant 1 : i32
      %112 = arith.addi %111, %c1_i32_44 : i32
      %113 = arith.index_cast %112 : i32 to index
      %c0_45 = arith.constant 0 : index
      %c0_46 = arith.constant 0 : index
      %114 = vector.load %arg4[%113, %c0_45, %c0_46] : memref<21x8x72xf32, #tpu.memory_space<vmem>>, vector<1x8x72xf32>
      %115 = vector.shape_cast %114 : vector<1x8x72xf32> to vector<8x72xf32>
      %c3_i32_47 = arith.constant 3 : i32
      %116 = arith.muli %c3_i32_47, %arg11 : i32
      %c1_i32_48 = arith.constant 1 : i32
      %117 = arith.addi %116, %c1_i32_48 : i32
      %118 = arith.index_cast %117 : i32 to index
      %c0_49 = arith.constant 0 : index
      %c0_50 = arith.constant 0 : index
      %119 = vector.load %arg5[%118, %c0_49, %c0_50] : memref<21x8x1xf32, #tpu.memory_space<vmem>>, vector<1x8x1xf32>
      %120 = vector.shape_cast %119 : vector<1x8x1xf32> to vector<8x1xf32>
      %c46_i32 = arith.constant 46 : i32
      %121 = tpu.dynamic_rotate %110 by %c46_i32 dim 1 : vector<8x512xf32>, i32 -> vector<8x512xf32>
      %c0_51 = arith.constant 0 : index
      %c0_52 = arith.constant 0 : index
      %122 = vector.load %arg10[%c0_51, %c0_52] : memref<72x512xf32, #tpu.memory_space<vmem>>, vector<8x512xf32>
      tpu.vector_store %arg10[%c0_51, %c0_52], %121 {strides = array<i32>} : memref<72x512xf32, #tpu.memory_space<vmem>>, vector<8x512xf32>,
      %c44_i32 = arith.constant 44 : i32
      %123 = tpu.dynamic_rotate %110 by %c44_i32 dim 1 : vector<8x512xf32>, i32 -> vector<8x512xf32>
      %c8_53 = arith.constant 8 : index
      %c0_54 = arith.constant 0 : index
      %124 = vector.load %arg10[%c8_53, %c0_54] : memref<72x512xf32, #tpu.memory_space<vmem>>, vector<8x512xf32>
      tpu.vector_store %arg10[%c8_53, %c0_54], %123 {strides = array<i32>} : memref<72x512xf32, #tpu.memory_space<vmem>>, vector<8x512xf32>,
      %c42_i32 = arith.constant 42 : i32
      %125 = tpu.dynamic_rotate %110 by %c42_i32 dim 1 : vector<8x512xf32>, i32 -> vector<8x512xf32>
      %c16_55 = arith.constant 16 : index
      %c0_56 = arith.constant 0 : index
      %126 = vector.load %arg10[%c16_55, %c0_56] : memref<72x512xf32, #tpu.memory_space<vmem>>, vector<8x512xf32>
      tpu.vector_store %arg10[%c16_55, %c0_56], %125 {strides = array<i32>} : memref<72x512xf32, #tpu.memory_space<vmem>>, vector<8x512xf32>,
      %c2_i32 = arith.constant 2 : i32
      %127 = tpu.dynamic_rotate %110 by %c2_i32 dim 1 : vector<8x512xf32>, i32 -> vector<8x512xf32>
      %c24_57 = arith.constant 24 : index
      %c0_58 = arith.constant 0 : index
      %128 = vector.load %arg10[%c24_57, %c0_58] : memref<72x512xf32, #tpu.memory_space<vmem>>, vector<8x512xf32>
      tpu.vector_store %arg10[%c24_57, %c0_58], %127 {strides = array<i32>} : memref<72x512xf32, #tpu.memory_space<vmem>>, vector<8x512xf32>,
      %c32_59 = arith.constant 32 : index
      %c0_60 = arith.constant 0 : index
      %129 = vector.load %arg10[%c32_59, %c0_60] : memref<72x512xf32, #tpu.memory_space<vmem>>, vector<8x512xf32>
      tpu.vector_store %arg10[%c32_59, %c0_60], %110 {strides = array<i32>} : memref<72x512xf32, #tpu.memory_space<vmem>>, vector<8x512xf32>,
      %c510_i32 = arith.constant 510 : i32
      %130 = tpu.dynamic_rotate %110 by %c510_i32 dim 1 : vector<8x512xf32>, i32 -> vector<8x512xf32>
      %c40_61 = arith.constant 40 : index
      %c0_62 = arith.constant 0 : index
      %131 = vector.load %arg10[%c40_61, %c0_62] : memref<72x512xf32, #tpu.memory_space<vmem>>, vector<8x512xf32>
      tpu.vector_store %arg10[%c40_61, %c0_62], %130 {strides = array<i32>} : memref<72x512xf32, #tpu.memory_space<vmem>>, vector<8x512xf32>,
      %c470_i32 = arith.constant 470 : i32
      %132 = tpu.dynamic_rotate %110 by %c470_i32 dim 1 : vector<8x512xf32>, i32 -> vector<8x512xf32>
      %c48_63 = arith.constant 48 : index
      %c0_64 = arith.constant 0 : index
      %133 = vector.load %arg10[%c48_63, %c0_64] : memref<72x512xf32, #tpu.memory_space<vmem>>, vector<8x512xf32>
      tpu.vector_store %arg10[%c48_63, %c0_64], %132 {strides = array<i32>} : memref<72x512xf32, #tpu.memory_space<vmem>>, vector<8x512xf32>,
      %c468_i32 = arith.constant 468 : i32
      %134 = tpu.dynamic_rotate %110 by %c468_i32 dim 1 : vector<8x512xf32>, i32 -> vector<8x512xf32>
      %c56_65 = arith.constant 56 : index
      %c0_66 = arith.constant 0 : index
      %135 = vector.load %arg10[%c56_65, %c0_66] : memref<72x512xf32, #tpu.memory_space<vmem>>, vector<8x512xf32>
      tpu.vector_store %arg10[%c56_65, %c0_66], %134 {strides = array<i32>} : memref<72x512xf32, #tpu.memory_space<vmem>>, vector<8x512xf32>,
      %c466_i32 = arith.constant 466 : i32
      %136 = tpu.dynamic_rotate %110 by %c466_i32 dim 1 : vector<8x512xf32>, i32 -> vector<8x512xf32>
      %c64_67 = arith.constant 64 : index
      %c0_68 = arith.constant 0 : index
      %137 = vector.load %arg10[%c64_67, %c0_68] : memref<72x512xf32, #tpu.memory_space<vmem>>, vector<8x512xf32>
      tpu.vector_store %arg10[%c64_67, %c0_68], %136 {strides = array<i32>} : memref<72x512xf32, #tpu.memory_space<vmem>>, vector<8x512xf32>,
      %c0_69 = arith.constant 0 : index
      %c0_70 = arith.constant 0 : index
      %138 = vector.load %arg10[%c0_69, %c0_70] : memref<72x512xf32, #tpu.memory_space<vmem>>, vector<72x512xf32>
      %cst_71 = arith.constant dense<0.000000e+00> : vector<8x512xf32>
      %139 = tpu.matmul %115, %138, %cst_71 {dimension_numbers = #tpu.dot_dimension_numbers<[1], [0], [0], [1], [0, 0, 1, 1], [], []>} : vector<8x72xf32>, vector<72x512xf32>, vector<8x512xf32> -> vector<8x512xf32>
      %140 = vector.broadcast %120 : vector<8x1xf32> to vector<8x512xf32>
      %141 = arith.addf %139, %140 : vector<8x512xf32>
      %cst_72 = arith.constant 0.000000e+00 : f32
      %142 = vector.broadcast %cst_72 : f32 to vector<8x512xf32>
      %143 = arith.maximumf %141, %142 : vector<8x512xf32>
      %144 = arith.addf %143, %110 : vector<8x512xf32>
      %145 = vector.broadcast %0 : vector<1x512xf32> to vector<8x512xf32>
      %146 = arith.mulf %144, %145 : vector<8x512xf32>
      %c3_i32_73 = arith.constant 3 : i32
      %147 = arith.muli %c3_i32_73, %arg11 : i32
      %c2_i32_74 = arith.constant 2 : i32
      %148 = arith.addi %147, %c2_i32_74 : i32
      %149 = arith.index_cast %148 : i32 to index
      %c0_75 = arith.constant 0 : index
      %c0_76 = arith.constant 0 : index
      %150 = vector.load %arg4[%149, %c0_75, %c0_76] : memref<21x8x72xf32, #tpu.memory_space<vmem>>, vector<1x8x72xf32>
      %151 = vector.shape_cast %150 : vector<1x8x72xf32> to vector<8x72xf32>
      %c3_i32_77 = arith.constant 3 : i32
      %152 = arith.muli %c3_i32_77, %arg11 : i32
      %c2_i32_78 = arith.constant 2 : i32
      %153 = arith.addi %152, %c2_i32_78 : i32
      %154 = arith.index_cast %153 : i32 to index
      %c0_79 = arith.constant 0 : index
      %c0_80 = arith.constant 0 : index
      %155 = vector.load %arg5[%154, %c0_79, %c0_80] : memref<21x8x1xf32, #tpu.memory_space<vmem>>, vector<1x8x1xf32>
      %156 = vector.shape_cast %155 : vector<1x8x1xf32> to vector<8x1xf32>
      %c69_i32 = arith.constant 69 : i32
      %157 = tpu.dynamic_rotate %146 by %c69_i32 dim 1 : vector<8x512xf32>, i32 -> vector<8x512xf32>
      %c0_81 = arith.constant 0 : index
      %c0_82 = arith.constant 0 : index
      %158 = vector.load %arg10[%c0_81, %c0_82] : memref<72x512xf32, #tpu.memory_space<vmem>>, vector<8x512xf32>
      tpu.vector_store %arg10[%c0_81, %c0_82], %157 {strides = array<i32>} : memref<72x512xf32, #tpu.memory_space<vmem>>, vector<8x512xf32>,
      %c66_i32 = arith.constant 66 : i32
      %159 = tpu.dynamic_rotate %146 by %c66_i32 dim 1 : vector<8x512xf32>, i32 -> vector<8x512xf32>
      %c8_83 = arith.constant 8 : index
      %c0_84 = arith.constant 0 : index
      %160 = vector.load %arg10[%c8_83, %c0_84] : memref<72x512xf32, #tpu.memory_space<vmem>>, vector<8x512xf32>
      tpu.vector_store %arg10[%c8_83, %c0_84], %159 {strides = array<i32>} : memref<72x512xf32, #tpu.memory_space<vmem>>, vector<8x512xf32>,
      %c63_i32 = arith.constant 63 : i32
      %161 = tpu.dynamic_rotate %146 by %c63_i32 dim 1 : vector<8x512xf32>, i32 -> vector<8x512xf32>
      %c16_85 = arith.constant 16 : index
      %c0_86 = arith.constant 0 : index
      %162 = vector.load %arg10[%c16_85, %c0_86] : memref<72x512xf32, #tpu.memory_space<vmem>>, vector<8x512xf32>
      tpu.vector_store %arg10[%c16_85, %c0_86], %161 {strides = array<i32>} : memref<72x512xf32, #tpu.memory_space<vmem>>, vector<8x512xf32>,
      %c3_i32_87 = arith.constant 3 : i32
      %163 = tpu.dynamic_rotate %146 by %c3_i32_87 dim 1 : vector<8x512xf32>, i32 -> vector<8x512xf32>
      %c24_88 = arith.constant 24 : index
      %c0_89 = arith.constant 0 : index
      %164 = vector.load %arg10[%c24_88, %c0_89] : memref<72x512xf32, #tpu.memory_space<vmem>>, vector<8x512xf32>
      tpu.vector_store %arg10[%c24_88, %c0_89], %163 {strides = array<i32>} : memref<72x512xf32, #tpu.memory_space<vmem>>, vector<8x512xf32>,
      %c32_90 = arith.constant 32 : index
      %c0_91 = arith.constant 0 : index
      %165 = vector.load %arg10[%c32_90, %c0_91] : memref<72x512xf32, #tpu.memory_space<vmem>>, vector<8x512xf32>
      tpu.vector_store %arg10[%c32_90, %c0_91], %146 {strides = array<i32>} : memref<72x512xf32, #tpu.memory_space<vmem>>, vector<8x512xf32>,
      %c509_i32 = arith.constant 509 : i32
      %166 = tpu.dynamic_rotate %146 by %c509_i32 dim 1 : vector<8x512xf32>, i32 -> vector<8x512xf32>
      %c40_92 = arith.constant 40 : index
      %c0_93 = arith.constant 0 : index
      %167 = vector.load %arg10[%c40_92, %c0_93] : memref<72x512xf32, #tpu.memory_space<vmem>>, vector<8x512xf32>
      tpu.vector_store %arg10[%c40_92, %c0_93], %166 {strides = array<i32>} : memref<72x512xf32, #tpu.memory_space<vmem>>, vector<8x512xf32>,
      %c449_i32 = arith.constant 449 : i32
      %168 = tpu.dynamic_rotate %146 by %c449_i32 dim 1 : vector<8x512xf32>, i32 -> vector<8x512xf32>
      %c48_94 = arith.constant 48 : index
      %c0_95 = arith.constant 0 : index
      %169 = vector.load %arg10[%c48_94, %c0_95] : memref<72x512xf32, #tpu.memory_space<vmem>>, vector<8x512xf32>
      tpu.vector_store %arg10[%c48_94, %c0_95], %168 {strides = array<i32>} : memref<72x512xf32, #tpu.memory_space<vmem>>, vector<8x512xf32>,
      %c446_i32 = arith.constant 446 : i32
      %170 = tpu.dynamic_rotate %146 by %c446_i32 dim 1 : vector<8x512xf32>, i32 -> vector<8x512xf32>
      %c56_96 = arith.constant 56 : index
      %c0_97 = arith.constant 0 : index
      %171 = vector.load %arg10[%c56_96, %c0_97] : memref<72x512xf32, #tpu.memory_space<vmem>>, vector<8x512xf32>
      tpu.vector_store %arg10[%c56_96, %c0_97], %170 {strides = array<i32>} : memref<72x512xf32, #tpu.memory_space<vmem>>, vector<8x512xf32>,
      %c443_i32 = arith.constant 443 : i32
      %172 = tpu.dynamic_rotate %146 by %c443_i32 dim 1 : vector<8x512xf32>, i32 -> vector<8x512xf32>
      %c64_98 = arith.constant 64 : index
      %c0_99 = arith.constant 0 : index
      %173 = vector.load %arg10[%c64_98, %c0_99] : memref<72x512xf32, #tpu.memory_space<vmem>>, vector<8x512xf32>
      tpu.vector_store %arg10[%c64_98, %c0_99], %172 {strides = array<i32>} : memref<72x512xf32, #tpu.memory_space<vmem>>, vector<8x512xf32>,
      %c0_100 = arith.constant 0 : index
      %c0_101 = arith.constant 0 : index
      %174 = vector.load %arg10[%c0_100, %c0_101] : memref<72x512xf32, #tpu.memory_space<vmem>>, vector<72x512xf32>
      %cst_102 = arith.constant dense<0.000000e+00> : vector<8x512xf32>
      %175 = tpu.matmul %151, %174, %cst_102 {dimension_numbers = #tpu.dot_dimension_numbers<[1], [0], [0], [1], [0, 0, 1, 1], [], []>} : vector<8x72xf32>, vector<72x512xf32>, vector<8x512xf32> -> vector<8x512xf32>
      %176 = vector.broadcast %156 : vector<8x1xf32> to vector<8x512xf32>
      %177 = arith.addf %175, %176 : vector<8x512xf32>
      %cst_103 = arith.constant 0.000000e+00 : f32
      %178 = vector.broadcast %cst_103 : f32 to vector<8x512xf32>
      %179 = arith.maximumf %177, %178 : vector<8x512xf32>
      %180 = arith.addf %179, %146 : vector<8x512xf32>
      %181 = vector.broadcast %0 : vector<1x512xf32> to vector<8x512xf32>
      %182 = arith.mulf %180, %181 : vector<8x512xf32>
      %c23_i32_104 = arith.constant 23 : i32
      %183 = tpu.dynamic_rotate %182 by %c23_i32_104 dim 1 : vector<8x512xf32>, i32 -> vector<8x512xf32>
      %c0_105 = arith.constant 0 : index
      %c0_106 = arith.constant 0 : index
      %184 = vector.load %arg10[%c0_105, %c0_106] : memref<72x512xf32, #tpu.memory_space<vmem>>, vector<8x512xf32>
      tpu.vector_store %arg10[%c0_105, %c0_106], %183 {strides = array<i32>} : memref<72x512xf32, #tpu.memory_space<vmem>>, vector<8x512xf32>,
      %c22_i32_107 = arith.constant 22 : i32
      %185 = tpu.dynamic_rotate %182 by %c22_i32_107 dim 1 : vector<8x512xf32>, i32 -> vector<8x512xf32>
      %c8_108 = arith.constant 8 : index
      %c0_109 = arith.constant 0 : index
      %186 = vector.load %arg10[%c8_108, %c0_109] : memref<72x512xf32, #tpu.memory_space<vmem>>, vector<8x512xf32>
      tpu.vector_store %arg10[%c8_108, %c0_109], %185 {strides = array<i32>} : memref<72x512xf32, #tpu.memory_space<vmem>>, vector<8x512xf32>,
      %c21_i32_110 = arith.constant 21 : i32
      %187 = tpu.dynamic_rotate %182 by %c21_i32_110 dim 1 : vector<8x512xf32>, i32 -> vector<8x512xf32>
      %c16_111 = arith.constant 16 : index
      %c0_112 = arith.constant 0 : index
      %188 = vector.load %arg10[%c16_111, %c0_112] : memref<72x512xf32, #tpu.memory_space<vmem>>, vector<8x512xf32>
      tpu.vector_store %arg10[%c16_111, %c0_112], %187 {strides = array<i32>} : memref<72x512xf32, #tpu.memory_space<vmem>>, vector<8x512xf32>,
      %c1_i32_113 = arith.constant 1 : i32
      %189 = tpu.dynamic_rotate %182 by %c1_i32_113 dim 1 : vector<8x512xf32>, i32 -> vector<8x512xf32>
      %c24_114 = arith.constant 24 : index
      %c0_115 = arith.constant 0 : index
      %190 = vector.load %arg10[%c24_114, %c0_115] : memref<72x512xf32, #tpu.memory_space<vmem>>, vector<8x512xf32>
      tpu.vector_store %arg10[%c24_114, %c0_115], %189 {strides = array<i32>} : memref<72x512xf32, #tpu.memory_space<vmem>>, vector<8x512xf32>,
      %c32_116 = arith.constant 32 : index
      %c0_117 = arith.constant 0 : index
      %191 = vector.load %arg10[%c32_116, %c0_117] : memref<72x512xf32, #tpu.memory_space<vmem>>, vector<8x512xf32>
      tpu.vector_store %arg10[%c32_116, %c0_117], %182 {strides = array<i32>} : memref<72x512xf32, #tpu.memory_space<vmem>>, vector<8x512xf32>,
      %c511_i32_118 = arith.constant 511 : i32
      %192 = tpu.dynamic_rotate %182 by %c511_i32_118 dim 1 : vector<8x512xf32>, i32 -> vector<8x512xf32>
      %c40_119 = arith.constant 40 : index
      %c0_120 = arith.constant 0 : index
      %193 = vector.load %arg10[%c40_119, %c0_120] : memref<72x512xf32, #tpu.memory_space<vmem>>, vector<8x512xf32>
      tpu.vector_store %arg10[%c40_119, %c0_120], %192 {strides = array<i32>} : memref<72x512xf32, #tpu.memory_space<vmem>>, vector<8x512xf32>,
      %c491_i32_121 = arith.constant 491 : i32
      %194 = tpu.dynamic_rotate %182 by %c491_i32_121 dim 1 : vector<8x512xf32>, i32 -> vector<8x512xf32>
      %c48_122 = arith.constant 48 : index
      %c0_123 = arith.constant 0 : index
      %195 = vector.load %arg10[%c48_122, %c0_123] : memref<72x512xf32, #tpu.memory_space<vmem>>, vector<8x512xf32>
      tpu.vector_store %arg10[%c48_122, %c0_123], %194 {strides = array<i32>} : memref<72x512xf32, #tpu.memory_space<vmem>>, vector<8x512xf32>,
      %c490_i32_124 = arith.constant 490 : i32
      %196 = tpu.dynamic_rotate %182 by %c490_i32_124 dim 1 : vector<8x512xf32>, i32 -> vector<8x512xf32>
      %c56_125 = arith.constant 56 : index
      %c0_126 = arith.constant 0 : index
      %197 = vector.load %arg10[%c56_125, %c0_126] : memref<72x512xf32, #tpu.memory_space<vmem>>, vector<8x512xf32>
      tpu.vector_store %arg10[%c56_125, %c0_126], %196 {strides = array<i32>} : memref<72x512xf32, #tpu.memory_space<vmem>>, vector<8x512xf32>,
      %c489_i32_127 = arith.constant 489 : i32
      %198 = tpu.dynamic_rotate %182 by %c489_i32_127 dim 1 : vector<8x512xf32>, i32 -> vector<8x512xf32>
      %c64_128 = arith.constant 64 : index
      %c0_129 = arith.constant 0 : index
      %199 = vector.load %arg10[%c64_128, %c0_129] : memref<72x512xf32, #tpu.memory_space<vmem>>, vector<8x512xf32>
      tpu.vector_store %arg10[%c64_128, %c0_129], %198 {strides = array<i32>} : memref<72x512xf32, #tpu.memory_space<vmem>>, vector<8x512xf32>,
      %200 = arith.index_cast %arg11 : i32 to index
      %c0_130 = arith.constant 0 : index
      %c0_131 = arith.constant 0 : index
      %201 = vector.load %arg6[%200, %c0_130, %c0_131] : memref<7x8x72xf32, #tpu.memory_space<vmem>>, vector<1x8x72xf32>
      %202 = vector.shape_cast %201 : vector<1x8x72xf32> to vector<8x72xf32>
      %c0_132 = arith.constant 0 : index
      %c0_133 = arith.constant 0 : index
      %203 = vector.load %arg10[%c0_132, %c0_133] : memref<72x512xf32, #tpu.memory_space<vmem>>, vector<72x512xf32>
      %cst_134 = arith.constant dense<0.000000e+00> : vector<8x512xf32>
      %204 = tpu.matmul %202, %203, %cst_134 {dimension_numbers = #tpu.dot_dimension_numbers<[1], [0], [0], [1], [0, 0, 1, 1], [], []>} : vector<8x72xf32>, vector<72x512xf32>, vector<8x512xf32> -> vector<8x512xf32>
      %205 = vector.extract_strided_slice %204 {offsets = [0, 0], sizes = [1, 512], strides = [1, 1]} : vector<8x512xf32> to vector<1x512xf32>
      %206 = arith.index_cast %arg11 : i32 to index
      %c0_135 = arith.constant 0 : index
      %c0_136 = arith.constant 0 : index
      %207 = vector.load %arg7[%206, %c0_135, %c0_136] : memref<7x1x1xf32, #tpu.memory_space<vmem>>, vector<1x1x1xf32>
      %208 = vector.shape_cast %207 : vector<1x1x1xf32> to vector<1x1xf32>
      %209 = vector.broadcast %208 : vector<1x1xf32> to vector<1x512xf32>
      %210 = arith.addf %205, %209 : vector<1x512xf32>
      %cst_137 = arith.constant 0.000000e+00 : f32
      %211 = vector.broadcast %cst_137 : f32 to vector<1x512xf32>
      %212 = arith.maximumf %210, %211 : vector<1x512xf32>
      %213 = arith.mulf %212, %0 : vector<1x512xf32>
      %214 = vector.broadcast %arg11 : i32 to vector<8x1xi32>
      %215 = arith.cmpi eq, %1, %214 : vector<8x1xi32>
      %216 = vector.shape_cast %213 : vector<1x512xf32> to vector<1x512xf32>
      %217 = vector.broadcast %216 : vector<1x512xf32> to vector<8x512xf32>
      %218 = vector.shape_cast %215 : vector<8x1xi1> to vector<8x1xi1>
      %219 = vector.broadcast %218 : vector<8x1xi1> to vector<8x512xi1>
      %220 = arith.select %219, %217, %arg13 : vector<8x512xi1>, vector<8x512xf32>
      scf.yield %213, %220 : vector<1x512xf32>, vector<8x512xf32>
    }
    %c7_i32_4 = arith.constant 7 : i32
    %c0_5 = arith.constant 0 : index
    %c0_6 = arith.constant 0 : index
    %c0_7 = arith.constant 0 : index
    %7 = vector.load %arg9[%c0_5, %c0_6, %c0_7] : memref<1x8x512xf32, #tpu.memory_space<vmem>>, vector<1x8x512xf32>
    %8 = vector.shape_cast %7 : vector<1x8x512xf32> to vector<8x512xf32>
    %9 = vector.shape_cast %6#1 : vector<8x512xf32> to vector<1x8x512xf32>
    tpu.vector_store %arg9[%c0_5, %c0_6, %c0_7], %9 {strides = array<i32>} : memref<1x8x512xf32, #tpu.memory_space<vmem>>, vector<1x8x512xf32>,
    return
  }
  func.func @transform_0(%arg0: i32) -> (i32, i32, i32) {
    %c0_i32 = arith.constant 0 : i32
    %c0_i32_0 = arith.constant 0 : i32
    %c0_i32_1 = arith.constant 0 : i32
    return %arg0, %c0_i32, %c0_i32_0 : i32, i32, i32
  }
  func.func @transform_1(%arg0: i32) -> (i32, i32, i32) {
    %c0_i32 = arith.constant 0 : i32
    %c0_i32_0 = arith.constant 0 : i32
    %c0_i32_1 = arith.constant 0 : i32
    %c0_i32_2 = arith.constant 0 : i32
    return %c0_i32, %c0_i32_0, %c0_i32_1 : i32, i32, i32
  }
  func.func @transform_2(%arg0: i32) -> (i32, i32, i32) {
    %c0_i32 = arith.constant 0 : i32
    %c0_i32_0 = arith.constant 0 : i32
    %c0_i32_1 = arith.constant 0 : i32
    %c0_i32_2 = arith.constant 0 : i32
    return %c0_i32, %c0_i32_0, %c0_i32_1 : i32, i32, i32
  }
  func.func @transform_3(%arg0: i32) -> (i32, i32, i32) {
    %c0_i32 = arith.constant 0 : i32
    %c0_i32_0 = arith.constant 0 : i32
    %c0_i32_1 = arith.constant 0 : i32
    %c0_i32_2 = arith.constant 0 : i32
    return %c0_i32, %c0_i32_0, %c0_i32_1 : i32, i32, i32
  }
  func.func @transform_4(%arg0: i32) -> (i32, i32, i32) {
    %c0_i32 = arith.constant 0 : i32
    %c0_i32_0 = arith.constant 0 : i32
    %c0_i32_1 = arith.constant 0 : i32
    %c0_i32_2 = arith.constant 0 : i32
    return %c0_i32, %c0_i32_0, %c0_i32_1 : i32, i32, i32
  }
  func.func @transform_5(%arg0: i32) -> (i32, i32, i32) {
    %c0_i32 = arith.constant 0 : i32
    %c0_i32_0 = arith.constant 0 : i32
    %c0_i32_1 = arith.constant 0 : i32
    %c0_i32_2 = arith.constant 0 : i32
    return %c0_i32, %c0_i32_0, %c0_i32_1 : i32, i32, i32
  }
  func.func @transform_6(%arg0: i32) -> (i32, i32, i32) {
    %c0_i32 = arith.constant 0 : i32
    %c0_i32_0 = arith.constant 0 : i32
    %c0_i32_1 = arith.constant 0 : i32
    %c0_i32_2 = arith.constant 0 : i32
    return %c0_i32, %c0_i32_0, %c0_i32_1 : i32, i32, i32
  }
  func.func @transform_7(%arg0: i32) -> (i32, i32) {
    %c0_i32 = arith.constant 0 : i32
    %c0_i32_0 = arith.constant 0 : i32
    %c0_i32_1 = arith.constant 0 : i32
    return %c0_i32, %c0_i32_0 : i32, i32
  }
  func.func @transform_8(%arg0: i32) -> (i32, i32, i32) {
    %c0_i32 = arith.constant 0 : i32
    %c0_i32_0 = arith.constant 0 : i32
    %c0_i32_1 = arith.constant 0 : i32
    return %arg0, %c0_i32, %c0_i32_0 : i32, i32, i32
  }
}

</mosaic_0001>

<bundles_post_ra>
// kernel: sm_forward.1
= control target key start
LH: loop header
LB: loop body
LE: loop exit
PB: predicated region body
PF: predicated region fallthrough
CT: control target
= control target key end

     0   :  { %s2963_s27 = smov 0   ;;  %s3791_s0 = inlined_call_operand.vmem [shape: f32[2,1,512], index: 0, kind: input, shape index: {}]   ;;  %s3792_s1 = inlined_call_operand.vmem [shape: f32[7,8,9], index: 1, kind: input, shape index: {}]   ;;  %s3793_s2 = inlined_call_operand.vmem [shape: f32[7,8,1], index: 2, kind: input, shape index: {}]   ;;  %s3794_s3 = inlined_call_operand.vmem [shape: f32[21,8,72], index: 3, kind: input, shape index: {}]   ;;  %s3795_s4 = inlined_call_operand.vmem [shape: f32[21,8,1], index: 4, kind: input, shape index: {}]   ;;  %s3796_s5 = inlined_call_operand.vmem [shape: f32[7,8,72], index: 5, kind: input, shape index: {}]   ;;  %s3797_s6 = inlined_call_operand.vmem [shape: f32[7,1,1], index: 6, kind: input, shape index: {}]   ;;  %s3798_s7 = inlined_call_operand.vmem [shape: f32[1,512], index: 7, kind: input, shape index: {}]   ;;  %s3799_s8 = inlined_call_operand.vmem [shape: f32[2,8,512], index: 8, kind: output, shape index: {}]  }
   0x1 LB: > { %s2242_s28 = sadd.s32 4294967295, %s2846_s27   ;;  %p2246_p0 = scmp.ge.s32.totalorder %s2846_s27, 1  ;;  %s2846_s27 = sphi %s2963_s27, %s18_s27  }
   0x2   : > { %p261_p1 = scmp.lt.s32.totalorder %s2846_s27, 3 }
   0x4   : > { %p262_p2 = pnand %p2246_p0, %p261_p1 }
   0x5   : > { %p294_p3 = scmp.lt.s32.totalorder (!%p262_p2), %s2242_s28, 1  ;;  %v2974_v0 = vld [vmem:[%s3798_s7] sm:$0xf] (!%p262_p2)  ;;  %v3800_v1 = vlaneseq (!%p262_p2)  ;;  %v3000_v12 = vmov (!%p262_p2), 0.0   ;;  %v3002_v13 = vmov (!%p262_p2), 0.0   ;;  %v3004_v14 = vmov (!%p262_p2), 0.0  }
   0x6   : > { %265 = sbr.rel (%p262_p2) target bundleno = 1745 (0x6d1), region = 52  ;;  %v3006_v15 = vmov (!%p262_p2), 0.0   ;;  %s3016_s17 = smov (!%p262_p2), 0  }
   0x7   : > { %v2977_v2 = vshrl.u32 (!%p262_p2), %v3800_v1, 7 }
   0x9   : > { %v2980_v3 = vsub.s32 (!%p262_p2), 0, %v2977_v2  ;;  %v3801_v4 = vsub.s32 (!%p262_p2), 1, %v2977_v2  ;;  %v3803_v5 = vsub.s32 (!%p262_p2), 2, %v2977_v2  ;;  %v3802_v6 = vsub.s32 (!%p262_p2), 3, %v2977_v2 }
   0xd   : > { %s3813_s28 = smov (!%p294_p3, %s2242_s28), 1 }
   0xe   : > { %s2247_s9 = sshll.u32 %s3813_s28, 2  ;;  %s2270_s10 = sshll.u32 %s3813_s28, 5 }
   0xf   : > { %s297_s13 = scalar_lea.vmem %s3791_s0, %s2247_s9  ;;  %s2991_s16 = scalar_lea.vmem %s3799_s8, %s2270_s10 }
  0x10   : > { %v306_v7 = vld [vmem:[%s297_s13] sm:$0xf] }
  0x11   : > { %v311_v8 = vrot.slane %v306_v7, %v2980_v3   ;;  %v315_v9 = vrot.slane %v306_v7, %v3801_v4   ;;  %v319_v10 = vrot.slane %v306_v7, %v3803_v5   ;;  %v323_v11 = vrot.slane %v306_v7, %v3802_v6  }
  0x12 LB: >> { %v2884_v16 = vmov 0   ;;  %v2885_v17 = vmov 1   ;;  %s2886_s18 = smov 23   ;;  %s3049_s19 = sshll.u32 %s2882_s17, 3  ;;  %v2887_v20 = vmov 2   ;;  %v2888_v21 = vmov 3   ;;  %s2882_s17 = sphi %s3016_s17, %s333_s17   ;;  %v2878_v8 = vphi %v311_v8, %v2099_v8   ;;  %v2874_v9 = vphi %v315_v9, %v2100_v9   ;;  %v2870_v10 = vphi %v319_v10, %v2101_v10   ;;  %v2866_v11 = vphi %v323_v11, %v2102_v11   ;;  %v2862_v15 = vphi %v3006_v15, %v3811_v15   ;;  %v2858_v14 = vphi %v3004_v14, %v3810_v14   ;;  %v2854_v13 = vphi %v3002_v13, %v3809_v13   ;;  %v2850_v12 = vphi %v3000_v12, %v3808_v12  }
  0x13   : >> { %2513 = vset.pattern.permute.xlu0 %v2884_v16  ;;  %2514 = vset.pattern.permute.xlu1 %v2885_v17  ;;  %s343_s22 = scalar_lea.vmem %s3792_s1, %s3049_s19  ;;  %s345_s25 = scalar_lea.vmem %s3793_s2, %s3049_s19  ;;  %v2890_v22 = vmov 6   ;;  %v2892_v23 = vmov 4   ;;  %v2894_v24 = vmov 5   ;;  %v2896_v25 = vmov 8  }
  0x14   : >> { %352 = vrot.lane.b32.xlu1 %v2878_v8, %s2886_s18  ;;  %v344_v18 = vld [vmem:[%s343_s22] sm:$0xff]  ;;  %s2889_s26 = smov 22   ;;  %s2891_s28 = smov 21   ;;  %v2897_v26 = vmov 7   ;;  %v3804_v1 = vlaneseq  ;;  %v526_v61 = vrot.slane %v2878_v8, %v2980_v3  ;;  %v530_v17 = vrot.slane %v2874_v9, %v2980_v3 }
  0x15   : >> { %369 = vperm.xlu0 %2513, %v344_v18   ;;  %v346_v19 = vld [vmem:[%s345_s25] sm:$0xff]  ;;  %s2893_s29 = smov 1   ;;  %s2895_s30 = smov 127   ;;  %v3805_v4 = vsub.s32 1, %v2977_v2  ;;  %vm919_vm8 = vcmask 588800  }
  0x16   : >> { %s2898_s9 = smov 107   ;;  %s2899_s10 = smov 106   ;;  %v3140_v51 = vand.u32 127, %v3804_v1 }
  0x17   : >> { %s2900_s11 = smov 105   ;;  %s2251_s12 = smul.u32 24, %s2882_s17 }
  0x18   : >> { %410 = vperm.xlu1 %2514, %v344_v18   ;;  %vm362_vm0 = vcmp.lt.s32.totalorder %v3140_v51, 23  ;;  %vm404_vm1 = vcmp.lt.s32.totalorder %v3140_v51, 22  ;;  %vm445_vm2 = vcmp.lt.s32.totalorder %v3140_v51, 21  ;;  %vm486_vm3 = vcmp.lt.s32.totalorder %v3140_v51, 1  ;;  %s2902_s23 = smov 44   ;;  %s2903_s24 = smov 46  }
  0x19   : >> { %349 = vperm.xlu0 %2513, %v346_v19   ;;  %v538_v19 = vrot.slane %v2866_v11, %v2980_v3  ;;  %vm555_vm4 = vcmp.lt.s32.totalorder %v3140_v51, 127  ;;  %vm596_vm5 = vcmp.lt.s32.totalorder %v3140_v51, 107  ;;  %vm637_vm6 = vcmp.lt.s32.totalorder %v3140_v51, 106  ;;  %s3393_s15 = scalar_lea.vmem %s3795_s4, %s2251_s12  ;;  %s3467_s22 = scalar_lea.vmem %s3794_s3, %s2251_s12 }
  0x1a   : >> { %vm678_vm7 = vcmp.lt.s32.totalorder %v3140_v51, 105  ;;  %s2904_s25 = smov 42   ;;  %s2905_s12 = smov 2   ;;  %vm1091_vm9 = vcmp.lt.s32.totalorder %v3140_v51, 46  ;;  %vm1108_vm10 = vcmp.lt.s32.totalorder %v3140_v51, 44  ;;  %vm1125_vm11 = vcmp.lt.s32.totalorder %v3140_v51, 42 }
  0x1b   : >> { %s2906_s13 = smov 126   ;;  %s2907_s14 = smov 86   ;;  %vm1142_vm12 = vcmp.lt.s32.totalorder %v3140_v51, 2  ;;  %vm1163_vm13 = vcmp.lt.s32.totalorder %v3140_v51, 126  ;;  %vm1197_vm14 = vcmp.lt.s32.totalorder %v3140_v51, 84  ;;  %vm1180_vm15 = vcmp.lt.s32.totalorder %v3140_v51, 86 }
  0x1c   : >> { %356 = vrot.lane.b32.xlu1 %v2870_v10, %s2886_s18  ;;  %s2908_s20 = smov 84   ;;  %s2909_s21 = smov 82  }
  0x1d   : >> { %2515 = vset.pattern.permute.xlu1 %v2887_v20  ;;  %354 = vrot.lane.b32.xlu0 %v2874_v9, %s2886_s18 }
  0x1e   : >> { %2516 = vset.pattern.permute.xlu0 %v2888_v21 }
  0x20   : >> { %451 = vperm.xlu1 %2515, %v344_v18  }
  0x21   : >> { %358 = vrot.lane.b32.xlu0 %v2866_v11, %s2886_s18 }
  0x24   : >> { %398 = vrot.lane.b32.xlu1 %v2874_v9, %s2889_s26 }
  0x25   : >> { %2519 = vset.pattern.permute.xlu1 %v2890_v22  ;;  %396 = vrot.lane.b32.xlu0 %v2878_v8, %s2889_s26 }
  0x28   : >> { %402 = vrot.lane.b32.xlu1 %v2866_v11, %s2889_s26 }
  0x29   : >> { %400 = vrot.lane.b32.xlu0 %v2870_v10, %s2889_s26 }
  0x2c   : >> { %437 = vrot.lane.b32.xlu1 %v2878_v8, %s2891_s28 }
  0x2d   : >> { %492 = vperm.xlu0 %2516, %v344_v18  }
  0x30   : >> { %439 = vrot.lane.b32.xlu1 %v2874_v9, %s2891_s28 }
  0x31   : >> { %441 = vrot.lane.b32.xlu0 %v2870_v10, %s2891_s28 }
  0x32   : >> { %2517 = vset.pattern.permute.xlu0 %v2892_v23 }
  0x34   : >> { %443 = vrot.lane.b32.xlu1 %v2866_v11, %s2891_s28 }
  0x35   : >> { %520 = vperm.xlu0 %2517, %v344_v18  }
  0x38   : >> { %478 = vrot.lane.b32.xlu1 %v2878_v8, %s2893_s29 }
  0x39   : >> { %482 = vrot.lane.b32.xlu0 %v2870_v10, %s2893_s29 }
  0x3a   : >> { %2518 = vset.pattern.permute.xlu0 %v2894_v24 }
  0x3c   : >> { %480 = vrot.lane.b32.xlu1 %v2874_v9, %s2893_s29 }
  0x3d   : >> { %561 = vperm.xlu0 %2518, %v344_v18  }
  0x40   : >> { %484 = vrot.lane.b32.xlu1 %v2866_v11, %s2893_s29 }
  0x41   : >> { %549 = vrot.lane.b32.xlu0 %v2874_v9, %s2895_s30 }
  0x42   : >> { %2521 = vset.pattern.permute.xlu0 %v2896_v25 }
  0x44   : >> { %602 = vperm.xlu1 %2519, %v344_v18  }
  0x45   : >> { %553 = vrot.lane.b32.xlu0 %v2866_v11, %s2895_s30 }
  0x48   : >> { %547 = vrot.lane.b32.xlu1 %v2878_v8, %s2895_s30 }
  0x49   : >> { %2520 = vset.pattern.permute.xlu1 %v2897_v26  ;;  %588 = vrot.lane.b32.xlu0 %v2878_v8, %s2898_s9 }
  0x4c   : >> { %551 = vrot.lane.b32.xlu1 %v2870_v10, %s2895_s30 }
  0x4d   : >> { %592 = vrot.lane.b32.xlu0 %v2870_v10, %s2898_s9 }
  0x50   : >> { %643 = vperm.xlu1 %2520, %v344_v18  }
  0x51   : >> { %684 = vperm.xlu0 %2521, %v344_v18   ;;  %v534_v18 = vrot.slane %v2870_v10, %v2980_v3 }
  0x54   : >> { %590 = vrot.lane.b32.xlu1 %v2874_v9, %s2898_s9 }
  0x55   : >> { %2733 = vset.pattern.permute.xlu1 %v2884_v16  ;;  %633 = vrot.lane.b32.xlu0 %v2870_v10, %s2899_s10 }
  0x56   : >> { %2592 = vset.pattern.permute.xlu0 %v2884_v16 }
  0x58   : >> { %594 = vrot.lane.b32.xlu1 %v2866_v11, %s2898_s9 }
  0x59   : >> { %670 = vrot.lane.b32.xlu0 %v2878_v8, %s2900_s11 }
  0x5c   : >> { %629 = vrot.lane.b32.xlu1 %v2878_v8, %s2899_s10 }
  0x5d   : >> { %674 = vrot.lane.b32.xlu0 %v2870_v10, %s2900_s11 }
  0x60   : >> { %631 = vrot.lane.b32.xlu1 %v2874_v9, %s2899_s10 }
  0x64   : >> { %635 = vrot.lane.b32.xlu1 %v2866_v11, %s2899_s10 }
  0x68   : >> { %672 = vrot.lane.b32.xlu1 %v2874_v9, %s2900_s11 }
  0x6c   : >> { %676 = vrot.lane.b32.xlu1 %v2866_v11, %s2900_s11 }
  0x86   : >> { %v353_v27 = vpop.permute.xlu1 %352 }
  0x94   : >> { %v3123_v28 = vpop.permute.xlu0 %369 }
  0x97   : >> { %v3125_v29 = vpop.permute.xlu1 %410 }
  0x98   : >> { %v3127_v30 = vpop.permute.xlu0 %349 }
  0x9b   : >> { %v357_v31 = vpop.permute.xlu1 %356 }
  0x9c   : >> { %v355_v32 = vpop.permute.xlu0 %354 }
  0x9d   : >> { %v364_v55 = vsel %vm362_vm0, %v355_v32, %v357_v31  ;;  %v365_v56 = vsel %vm362_vm0, %v353_v27, %v355_v32 }
  0x9e   : >> { %v379_v62 = vrot.slane %v365_v56, %v2980_v3  ;;  %v383_v63 = vrot.slane %v364_v55, %v2980_v3 }
  0x9f   : >> { %v3129_v33 = vpop.permute.xlu1 %451 }
  0xa0   : >> { %v359_v34 = vpop.permute.xlu0 %358 }
  0xa1   : >> { %v363_v59 = vsel %vm362_vm0, %v357_v31, %v359_v34  ;;  %v366_v60 = vsel %vm362_vm0, %v359_v34, %v353_v27  ;;  %v389_v34 = vmul.f32 %v379_v62, %v3123_v28 }
  0xa2   : >> { %v375_v20 = vrot.slane %v366_v60, %v2980_v3  ;;  %v387_v21 = vrot.slane %v363_v59, %v2980_v3 }
  0xa3   : >> { %v399_v35 = vpop.permute.xlu1 %398 }
  0xa4   : >> { %v397_v36 = vpop.permute.xlu0 %396 }
  0xa5   : >> { %v407_v7 = vsel %vm404_vm1, %v397_v36, %v399_v35 }
  0xa6   : >> { %v420_v26 = vrot.slane %v407_v7, %v2980_v3 }
  0xa7   : >> { %v403_v37 = vpop.permute.xlu1 %402 }
  0xa8   : >> { %v401_v38 = vpop.permute.xlu0 %400  ;;  %v408_v22 = vsel %vm404_vm1, %v403_v37, %v397_v36  ;;  %v3199_v36 = vrot.slane %v2974_v0, %v2980_v3 }
  0xa9   : >> { %v406_v16 = vsel %vm404_vm1, %v399_v35, %v401_v38  ;;  %v405_v23 = vsel %vm404_vm1, %v401_v38, %v403_v37  ;;  %v390_v35 = vmul.f32 %v383_v63, %v3123_v28  ;;  %v3204_v37 = vrot.slane %v2974_v0, %v3805_v4 }
  0xaa   : >> { %v424_v27 = vrot.slane %v406_v16, %v2980_v3  ;;  %v416_v38 = vrot.slane %v408_v22, %v2980_v3  ;;  %v428_v55 = vrot.slane %v405_v23, %v2980_v3  ;;  %v391_v22 = vmul.f32 %v387_v21, %v3123_v28 }
  0xab   : >> { %v438_v39 = vpop.permute.xlu1 %437 }
  0xac   : >> { %v3131_v40 = vpop.permute.xlu0 %492 }
  0xaf   : >> { %v440_v41 = vpop.permute.xlu1 %439 }
  0xb0   : >> { %v442_v42 = vpop.permute.xlu0 %441  ;;  %v448_v31 = vsel %vm445_vm2, %v438_v39, %v440_v41 }
  0xb1   : >> { %v447_v32 = vsel %vm445_vm2, %v440_v41, %v442_v42  ;;  %v461_v59 = vrot.slane %v448_v31, %v2980_v3 }
  0xb2   : >> { %v465_v60 = vrot.slane %v447_v32, %v2980_v3 }
  0xb3   : >> { %v444_v43 = vpop.permute.xlu1 %443 }
  0xb4   : >> { %v3133_v44 = vpop.permute.xlu0 %520  ;;  %v446_v41 = vsel %vm445_vm2, %v442_v42, %v444_v43  ;;  %v449_v56 = vsel %vm445_vm2, %v444_v43, %v438_v39  ;;  %v388_v42 = vmul.f32 %v375_v20, %v3123_v28  ;;  %v430_v39 = vmul.f32 %v420_v26, %v3125_v29 }
  0xb5   : >> { %v431_v43 = vmul.f32 %v424_v27, %v3125_v29  ;;  %v457_v23 = vrot.slane %v449_v56, %v2980_v3  ;;  %v469_v31 = vrot.slane %v446_v41, %v2980_v3  ;;  %v429_v20 = vmul.f32 %v416_v38, %v3125_v29 }
  0xb6   : >> { %v432_v28 = vmul.f32 %v428_v55, %v3125_v29  ;;  %v393_v27 = vadd.f32 %v389_v34, %v3127_v30  ;;  %v394_v41 = vadd.f32 %v390_v35, %v3127_v30  ;;  %v471_v56 = vmul.f32 %v461_v59, %v3129_v33 }
  0xb7   : >> { %v479_v45 = vpop.permute.xlu1 %478  ;;  %v473_v34 = vmul.f32 %v469_v31, %v3129_v33  ;;  %v541_v9 = vmul.f32 %v534_v18, %v3133_v44 }
  0xb8   : >> { %v483_v46 = vpop.permute.xlu0 %482  ;;  %v434_v55 = vadd.f32 %v430_v39, %v393_v27 }
  0xbb   : >> { %v481_v47 = vpop.permute.xlu1 %480 }
  0xbc   : >> { %v3135_v48 = vpop.permute.xlu0 %561  ;;  %v488_v62 = vsel %vm486_vm3, %v481_v47, %v483_v46  ;;  %v489_v63 = vsel %vm486_vm3, %v479_v45, %v481_v47 }
  0xbd   : >> { %v502_v21 = vrot.slane %v489_v63, %v2980_v3  ;;  %v506_v26 = vrot.slane %v488_v62, %v2980_v3  ;;  %v435_v63 = vadd.f32 %v431_v43, %v394_v41  ;;  %v470_v62 = vmul.f32 %v457_v23, %v3129_v33 }
  0xbf   : >> { %v485_v49 = vpop.permute.xlu1 %484  ;;  %v513_v6 = vmul.f32 %v506_v26, %v3131_v40 }
  0xc0   : >> { %v3137_v50 = vpop.permute.xlu0 %549  ;;  %v487_v47 = vsel %vm486_vm3, %v483_v46, %v485_v49  ;;  %v490_v32 = vsel %vm486_vm3, %v485_v49, %v479_v45  ;;  %v472_v46 = vmul.f32 %v465_v60, %v3129_v33  ;;  %v392_v45 = vadd.f32 %v388_v42, %v3127_v30 }
  0xc1   : >> { %v395_v49 = vadd.f32 %v391_v22, %v3127_v30  ;;  %v498_v38 = vrot.slane %v490_v32, %v2980_v3  ;;  %v510_v29 = vrot.slane %v487_v47, %v2980_v3  ;;  %v512_v60 = vmul.f32 %v502_v21, %v3131_v40 }
  0xc2   : >> { %v433_v4 = vadd.f32 %v429_v20, %v392_v45  ;;  %v475_v42 = vadd.f32 %v471_v56, %v434_v55  ;;  %v476_v5 = vadd.f32 %v472_v46, %v435_v63  ;;  %v539_v30 = vmul.f32 %v526_v61, %v3133_v44 }
  0xc3   : >> { %v3142_v52 = vpop.permute.xlu1 %602  ;;  %v436_v59 = vadd.f32 %v432_v28, %v395_v49  ;;  %v540_v22 = vmul.f32 %v530_v17, %v3133_v44  ;;  %v511_v39 = vmul.f32 %v498_v38, %v3131_v40  ;;  %v514_v43 = vmul.f32 %v510_v29, %v3131_v40 }
  0xc4   : >> { %v3144_v53 = vpop.permute.xlu0 %553  ;;  %v474_v61 = vadd.f32 %v470_v62, %v433_v4  ;;  %v542_v40 = vmul.f32 %v538_v19, %v3133_v44  ;;  %v516_v17 = vadd.f32 %v512_v60, %v475_v42  ;;  %v517_v47 = vadd.f32 %v513_v6, %v476_v5 }
  0xc5   : >> { %v477_v31 = vadd.f32 %v473_v34, %v436_v59 }
  0xc6   : >> { %v515_v19 = vadd.f32 %v511_v39, %v474_v61  ;;  %v544_v26 = vadd.f32 %v540_v22, %v516_v17  ;;  %v545_v27 = vadd.f32 %v541_v9, %v517_v47 }
  0xc7   : >> { %v3147_v54 = vpop.permute.xlu1 %547  ;;  %v518_v32 = vadd.f32 %v514_v43, %v477_v31 }
  0xc8   : >> { %v3154_v57 = vpop.permute.xlu0 %588  ;;  %v558_v23 = vsel %vm555_vm4, %v3147_v54, %v3137_v50  ;;  %v559_v10 = vsel %vm555_vm4, %v3144_v53, %v3147_v54  ;;  %v543_v55 = vadd.f32 %v539_v30, %v515_v19 }
  0xc9   : >> { %v567_v11 = vrot.slane %v558_v23, %v2980_v3  ;;  %v579_v21 = vrot.slane %v559_v10, %v2980_v3  ;;  %v546_v63 = vadd.f32 %v542_v40, %v518_v32 }
  0xcb   : >> { %v3156_v58 = vpop.permute.xlu1 %551  ;;  %v580_v56 = vmul.f32 %v567_v11, %v3135_v48  ;;  %v583_v60 = vmul.f32 %v579_v21, %v3135_v48 }
  0xcc   : >> { %v3184_v24 = vpop.permute.xlu0 %592  ;;  %v557_v8 = vsel %vm555_vm4, %v3137_v50, %v3156_v58  ;;  %v556_v5 = vsel %vm555_vm4, %v3156_v58, %v3144_v53 }
  0xcd   : >> { %v571_v6 = vrot.slane %v557_v8, %v2980_v3  ;;  %v575_v41 = vrot.slane %v556_v5, %v2980_v3  ;;  %v584_v43 = vadd.f32 %v580_v56, %v543_v55 }
  0xcf   : >> { %v3186_v25 = vpop.permute.xlu1 %643  ;;  %v581_v46 = vmul.f32 %v571_v6, %v3135_v48  ;;  %v582_v42 = vmul.f32 %v575_v41, %v3135_v48 }
  0xd0   : >> { %v3219_v16 = vpop.permute.xlu0 %684 }
  0xd3   : >> { %v591_v7 = vpop.permute.xlu1 %590 }
  0xd4   : >> { %v634_v35 = vpop.permute.xlu0 %633  ;;  %v598_v50 = vsel %vm596_vm5, %v591_v7, %v3184_v24  ;;  %v599_v4 = vsel %vm596_vm5, %v3154_v57, %v591_v7 }
  0xd5   : >> { %v608_v54 = vrot.slane %v599_v4, %v2980_v3  ;;  %v612_v28 = vrot.slane %v598_v50, %v2980_v3  ;;  %v587_v50 = vadd.f32 %v583_v60, %v546_v63  ;;  %v586_v4 = vadd.f32 %v582_v42, %v545_v27  ;;  %v745_v42 = vld [vmem:[%s3393_s15] sm:$0xff] }
  0xd6   : >> { %v2901_v60 = vmov 0.0  }
  0xd7   : >> { %v595_v1 = vpop.permute.xlu1 %594  ;;  %v621_v62 = vmul.f32 %v608_v54, %v3142_v52  ;;  %v622_v34 = vmul.f32 %v612_v28, %v3142_v52  ;;  %987 = vmatprep.mubr.f32.mxu0 %v2901_v60  ;;  %1058 = vmatprep.mubr.f32.mxu1 %v2901_v60 }
  0xd8   : >> { %v671_v18 = vpop.permute.xlu0 %670  ;;  %v597_v53 = vsel %vm596_vm5, %v3184_v24, %v595_v1  ;;  %v600_v58 = vsel %vm596_vm5, %v595_v1, %v3154_v57 }
  0xd9   : >> { %v616_v24 = vrot.slane %v597_v53, %v2980_v3  ;;  %v620_v29 = vrot.slane %v600_v58, %v2980_v3  ;;  %v625_v9 = vadd.f32 %v621_v62, %v584_v43 }
  0xdb   : >> { %v630_v33 = vpop.permute.xlu1 %629  ;;  %v623_v8 = vmul.f32 %v616_v24, %v3142_v52  ;;  %v624_v61 = vmul.f32 %v620_v29, %v3142_v52 }
  0xdc   : >> { %v675_v59 = vpop.permute.xlu0 %674 }
  0xdd   : >> { %v627_v32 = vadd.f32 %v623_v8, %v586_v4 }
  0xdf   : >> { %v632_v44 = vpop.permute.xlu1 %631 }
  0xe0   : >> { %v640_v7 = vsel %vm637_vm6, %v630_v33, %v632_v44  ;;  %v639_v20 = vsel %vm637_vm6, %v632_v44, %v634_v35 }
  0xe1   : >> { %v649_v45 = vrot.slane %v640_v7, %v2980_v3  ;;  %v653_v49 = vrot.slane %v639_v20, %v2980_v3  ;;  %v628_v7 = vadd.f32 %v624_v61, %v587_v50 }
  0xe3   : >> { %v636_v38 = vpop.permute.xlu1 %635  ;;  %v662_v23 = vmul.f32 %v649_v45, %v3186_v25  ;;  %v663_v30 = vmul.f32 %v653_v49, %v3186_v25  ;;  %v3806_v45 = vsub.s32 2, %v2977_v2 }
  0xe4   : >> { %v638_v1 = vsel %vm637_vm6, %v634_v35, %v636_v38  ;;  %v641_v57 = vsel %vm637_vm6, %v636_v38, %v630_v33  ;;  %v585_v35 = vadd.f32 %v581_v46, %v544_v26 }
  0xe5   : >> { %v657_v22 = vrot.slane %v638_v1, %v2980_v3  ;;  %v661_v39 = vrot.slane %v641_v57, %v2980_v3  ;;  %v666_v5 = vadd.f32 %v662_v23, %v625_v9  ;;  %v3346_v49 = vrot.slane %v2974_v0, %v3806_v45 }
  0xe6   : >> { %v626_v40 = vadd.f32 %v622_v34, %v585_v35 }
  0xe7   : >> { %v673_v33 = vpop.permute.xlu1 %672  ;;  %v664_v10 = vmul.f32 %v657_v22, %v3186_v25  ;;  %v665_v11 = vmul.f32 %v661_v39, %v3186_v25 }
  0xe8   : >> { %v681_v31 = vsel %vm678_vm7, %v671_v18, %v673_v33  ;;  %v680_v48 = vsel %vm678_vm7, %v673_v33, %v675_v59  ;;  %v667_v52 = vadd.f32 %v663_v30, %v626_v40 }
  0xe9   : >> { %v690_v17 = vrot.slane %v681_v31, %v2980_v3  ;;  %v694_v47 = vrot.slane %v680_v48, %v2980_v3  ;;  %v668_v21 = vadd.f32 %v664_v10, %v627_v32  ;;  %v669_v26 = vadd.f32 %v665_v11, %v628_v7 }
  0xeb   : >> { %v703_v6 = vmul.f32 %v690_v17, %v3219_v16  ;;  %v704_v44 = vmul.f32 %v694_v47, %v3219_v16  ;;  %v677_v19 = vpop.permute.xlu1 %676 }
  0xec   : >> { %v679_v20 = vsel %vm678_vm7, %v675_v59, %v677_v19  ;;  %v682_v54 = vsel %vm678_vm7, %v677_v19, %v671_v18  ;;  %v3807_v18 = vsub.s32 3, %v2977_v2 }
  0xed   : >> { %v707_v28 = vadd.f32 %v703_v6, %v666_v5  ;;  %v708_v53 = vadd.f32 %v704_v44, %v667_v52  ;;  %v698_v58 = vrot.slane %v679_v20, %v2980_v3  ;;  %v702_v25 = vrot.slane %v682_v54, %v2980_v3 }
  0xee   : >> { %v3351_v38 = vrot.slane %v2974_v0, %v3807_v18 }
  0xef   : >> { %v711_v27 = vmax.f32 %v707_v28, 0.0  ;;  %v712_v41 = vmax.f32 %v708_v53, 0.0  ;;  %v705_v56 = vmul.f32 %v698_v58, %v3219_v16  ;;  %v706_v46 = vmul.f32 %v702_v25, %v3219_v16 }
  0xf1   : >> { %v3354_v24 = vmul.f32 %v3199_v36, %v711_v27  ;;  %v3357_v29 = vmul.f32 %v3204_v37, %v712_v41  ;;  %v709_v1 = vadd.f32 %v705_v56, %v668_v21  ;;  %v710_v57 = vadd.f32 %v706_v46, %v669_v26 }
  0xf3   : >> { %v713_v55 = vmax.f32 %v709_v1, 0.0  ;;  %v714_v16 = vmax.f32 %v710_v57, 0.0  ;;  %v2522_v63 = vpack.i.bf16 %v3357_v29, %v3354_v24 }
  0xf5   : >> { %v3362_v62 = vmul.f32 %v3346_v49, %v713_v55  ;;  %v3365_v34 = vmul.f32 %v3351_v38, %v714_v16  ;;  %2523 = vrot.lane.b32.xlu0 %v2522_v63, %s2886_s18 }
  0xf7   : >> { %v2527_v59 = vpack.i.bf16 %v3365_v34, %v3362_v62 }
  0xf9   : >> { %2533 = vrot.lane.b32.xlu0 %v2522_v63, %s2889_s26  ;;  %2528 = vrot.lane.b32.xlu1 %v2527_v59, %s2886_s18 }
  0xfd   : >> { %2543 = vrot.lane.b32.xlu0 %v2522_v63, %s2891_s28  ;;  %2538 = vrot.lane.b32.xlu1 %v2527_v59, %s2889_s26 }
 0x101   : >> { %2553 = vrot.lane.b32.xlu0 %v2522_v63, %s2893_s29  ;;  %2548 = vrot.lane.b32.xlu1 %v2527_v59, %s2891_s28 }
 0x105   : >> { %2563 = vrot.lane.b32.xlu0 %v2522_v63, %s2895_s30  ;;  %2558 = vrot.lane.b32.xlu1 %v2527_v59, %s2893_s29 }
 0x109   : >> { %2573 = vrot.lane.b32.xlu0 %v2522_v63, %s2898_s9  ;;  %2568 = vrot.lane.b32.xlu1 %v2527_v59, %s2895_s30 }
 0x10d   : >> { %2583 = vrot.lane.b32.xlu0 %v2522_v63, %s2899_s10  ;;  %2578 = vrot.lane.b32.xlu1 %v2527_v59, %s2898_s9 }
 0x111   : >> { %862 = vrot.lane.b32.xlu0 %v3354_v24, %s2900_s11  ;;  %2588 = vrot.lane.b32.xlu1 %v2527_v59, %s2899_s10 }
 0x115   : >> { %866 = vrot.lane.b32.xlu0 %v3362_v62, %s2900_s11  ;;  %864 = vrot.lane.b32.xlu1 %v3357_v29, %s2900_s11 }
 0x119   : >> { %868 = vrot.lane.b32.xlu1 %v3365_v34, %s2900_s11  ;;  %916 = vperm.xlu0 %2592, %v745_v42  }
 0x167   : >> { %v2524_v22 = vpop.permute.xlu0 %2523 }
 0x168   : >> { %v2526_v39 = vunpack.i.h.bf16 %v2524_v22  ;;  %v2525_v43 = vunpack.i.l.bf16 %v2524_v22 }
 0x16a   : >> { %v756_v31 = vsel %vm362_vm0, %v2525_v43, %v2526_v39 }
 0x16b   : >> { %v2534_v35 = vpop.permute.xlu0 %2533  ;;  %v2529_v23 = vpop.permute.xlu1 %2528 }
 0x16c   : >> { %v2536_v30 = vunpack.i.h.bf16 %v2534_v35  ;;  %v2535_v33 = vunpack.i.l.bf16 %v2534_v35  ;;  %v2531_v8 = vunpack.i.h.bf16 %v2529_v23  ;;  %v2530_v61 = vunpack.i.l.bf16 %v2529_v23 }
 0x16e   : >> { %v772_v48 = vsel %vm404_vm1, %v2535_v33, %v2536_v30  ;;  %v757_v10 = vsel %vm362_vm0, %v2531_v8, %v2525_v43  ;;  %v754_v11 = vsel %vm362_vm0, %v2530_v61, %v2531_v8  ;;  %v755_v5 = vsel %vm362_vm0, %v2526_v39, %v2530_v61 }
 0x16f   : >> { %v2544_v9 = vpop.permute.xlu0 %2543  ;;  %v2539_v40 = vpop.permute.xlu1 %2538  ;;  %v2271_v17 = vpack.c.bf16 %v772_v48, %v756_v31 }
 0x170   : >> { %v2541_v47 = vunpack.i.h.bf16 %v2539_v40  ;;  %v2540_v50 = vunpack.i.l.bf16 %v2539_v40  ;;  %v2546_v4 = vunpack.i.h.bf16 %v2544_v9  ;;  %v2545_v52 = vunpack.i.l.bf16 %v2544_v9 }
 0x171   : >> { %2272 = vmatprep.subr.bf16.mxu0 %v2271_v17 }
 0x172   : >> { %v773_v6 = vsel %vm404_vm1, %v2541_v47, %v2535_v33  ;;  %v770_v44 = vsel %vm404_vm1, %v2540_v50, %v2541_v47  ;;  %v771_v19 = vsel %vm404_vm1, %v2536_v30, %v2540_v50  ;;  %v788_v26 = vsel %vm445_vm2, %v2545_v52, %v2546_v4 }
 0x173   : >> { %v2554_v32 = vpop.permute.xlu0 %2553  ;;  %v2549_v7 = vpop.permute.xlu1 %2548  ;;  %v2273_v20 = vpack.c.bf16 %v773_v6, %v757_v10  ;;  %v2287_v54 = vpack.c.bf16 %v770_v44, %v754_v11  ;;  %v2289_v28 = vpack.c.bf16 %v771_v19, %v755_v5 }
 0x174   : >> { %v2556_v53 = vunpack.i.h.bf16 %v2554_v32  ;;  %v2555_v58 = vunpack.i.l.bf16 %v2554_v32  ;;  %v2551_v25 = vunpack.i.h.bf16 %v2549_v7  ;;  %v2550_v21 = vunpack.i.l.bf16 %v2549_v7 }
 0x175   : >> { %2274 = vmatpush1.bf16.msra.mxu0 %v2273_v20  ;;  %2288 = vmatprep.subr.bf16.mxu1 %v2287_v54 }
 0x176   : >> { %2290 = vmatpush1.bf16.msra.mxu1 %v2289_v28  ;;  %v804_v27 = vsel %vm486_vm3, %v2555_v58, %v2556_v53  ;;  %v789_v55 = vsel %vm445_vm2, %v2551_v25, %v2545_v52  ;;  %v786_v16 = vsel %vm445_vm2, %v2550_v21, %v2551_v25  ;;  %v787_v42 = vsel %vm445_vm2, %v2546_v4, %v2550_v21 }
 0x177   : >> { %v2564_v41 = vpop.permute.xlu0 %2563  ;;  %v2559_v56 = vpop.permute.xlu1 %2558  ;;  %v2275_v46 = vpack.c.bf16 %v804_v27, %v788_v26 }
 0x178   : >> { %v2561_v45 = vunpack.i.h.bf16 %v2559_v56  ;;  %v2560_v18 = vunpack.i.l.bf16 %v2559_v56  ;;  %v2566_v1 = vunpack.i.h.bf16 %v2564_v41  ;;  %v2565_v57 = vunpack.i.l.bf16 %v2564_v41 }
 0x179   : >> { %2276 = vmatprep.subr.bf16.mxu0 %v2275_v46 }
 0x17a   : >> { %v805_v63 = vsel %vm486_vm3, %v2561_v45, %v2555_v58  ;;  %v802_v59 = vsel %vm486_vm3, %v2560_v18, %v2561_v45  ;;  %v803_v22 = vsel %vm486_vm3, %v2556_v53, %v2560_v18  ;;  %v824_v61 = vsel %vm555_vm4, %v2565_v57, %v2566_v1 }
 0x17b   : >> { %v2574_v39 = vpop.permute.xlu0 %2573  ;;  %v2569_v43 = vpop.permute.xlu1 %2568  ;;  %v2277_v35 = vpack.c.bf16 %v805_v63, %v789_v55  ;;  %v2291_v23 = vpack.c.bf16 %v802_v59, %v786_v16  ;;  %v2293_v30 = vpack.c.bf16 %v803_v22, %v787_v42  ;;  %v2281_v10 = vpack.c.bf16 %v824_v61, %v3354_v24  ;;  %v743_v42 = vld [vmem:[%s3467_s22] sm:$0xff] }
 0x17c   : >> { %v2571_v33 = vunpack.i.h.bf16 %v2569_v43  ;;  %v2570_v8 = vunpack.i.l.bf16 %v2569_v43  ;;  %v2576_v44 = vunpack.i.h.bf16 %v2574_v39  ;;  %v2575_v19 = vunpack.i.l.bf16 %v2574_v39 }
 0x17d   : >> { %2278 = vmatpush1.bf16.msra.mxu0 %v2277_v35  ;;  %2292 = vmatprep.subr.bf16.mxu1 %v2291_v23 }
 0x17e   : >> { %2294 = vmatpush1.bf16.msra.mxu1 %v2293_v30  ;;  %v823_v31 = vsel %vm555_vm4, %v2566_v1, %v2570_v8  ;;  %v825_v48 = vsel %vm555_vm4, %v2571_v33, %v2565_v57  ;;  %v822_v9 = vsel %vm555_vm4, %v2570_v8, %v2571_v33  ;;  %v840_v18 = vsel %vm596_vm5, %v2575_v19, %v2576_v44 }
 0x17f   : >> { %v2584_v40 = vpop.permute.xlu0 %2583  ;;  %v2579_v17 = vpop.permute.xlu1 %2578  ;;  %v2279_v47 = vpack.c.bf16 %v823_v31, %v3357_v29  ;;  %v2295_v50 = vpack.c.bf16 %v825_v48, %v3365_v34  ;;  %v2297_v4 = vpack.c.bf16 %v822_v9, %v3362_v62 }
 0x180   : >> { %v2586_v11 = vunpack.i.h.bf16 %v2584_v40  ;;  %v2585_v5 = vunpack.i.l.bf16 %v2584_v40  ;;  %v2581_v52 = vunpack.i.h.bf16 %v2579_v17  ;;  %v2580_v6 = vunpack.i.l.bf16 %v2579_v17 }
 0x181   : >> { %2280 = vmatprep.subr.bf16.mxu0 %v2279_v47  ;;  %2296 = vmatprep.subr.bf16.mxu1 %v2295_v50 }
 0x182   : >> { %2282 = vmatpush1.bf16.msra.mxu0 %v2281_v10  ;;  %2298 = vmatpush1.bf16.msra.mxu1 %v2297_v4  ;;  %v839_v28 = vsel %vm596_vm5, %v2576_v44, %v2580_v6  ;;  %v841_v53 = vsel %vm596_vm5, %v2581_v52, %v2575_v19  ;;  %v856_v58 = vsel %vm637_vm6, %v2585_v5, %v2586_v11 }
 0x183   : >> { %v863_v32 = vpop.permute.xlu0 %862  ;;  %v2589_v7 = vpop.permute.xlu1 %2588  ;;  %v838_v26 = vsel %vm596_vm5, %v2580_v6, %v2581_v52  ;;  %v2285_v57 = vpack.c.bf16 %v856_v58, %v840_v18 }
 0x184   : >> { %v2591_v20 = vunpack.i.h.bf16 %v2589_v7  ;;  %v2590_v54 = vunpack.i.l.bf16 %v2589_v7 }
 0x186   : >> { %v855_v25 = vsel %vm637_vm6, %v2586_v11, %v2590_v54  ;;  %v857_v21 = vsel %vm637_vm6, %v2591_v20, %v2585_v5  ;;  %v854_v27 = vsel %vm637_vm6, %v2590_v54, %v2591_v20 }
 0x187   : >> { %v867_v41 = vpop.permute.xlu0 %866  ;;  %v865_v56 = vpop.permute.xlu1 %864  ;;  %v2283_v46 = vpack.c.bf16 %v855_v25, %v839_v28  ;;  %v2299_v45 = vpack.c.bf16 %v857_v21, %v841_v53  ;;  %v2301_v1 = vpack.c.bf16 %v854_v27, %v838_v26 }
 0x188   : >> { %v871_v55 = vsel %vm678_vm7, %v865_v56, %v867_v41  ;;  %v872_v22 = vsel %vm678_vm7, %v863_v32, %v865_v56 }
 0x189   : >> { %2284 = vmatprep.subr.bf16.mxu0 %v2283_v46  ;;  %2300 = vmatprep.subr.bf16.mxu1 %v2299_v45 }
 0x18a   : >> { %2286 = vmatpush1.bf16.msra.mxu0 %v2285_v57  ;;  %2302 = vmatpush1.bf16.msra.mxu1 %v2301_v1 }
 0x18b   : >> { %v869_v16 = vpop.permute.xlu1 %868  ;;  %939 = vmatprep.subr.mxu0 %v871_v55 }
 0x18c   : >> { %v873_v63 = vsel %vm678_vm7, %v869_v16, %v863_v32  ;;  %v870_v59 = vsel %vm678_vm7, %v867_v41, %v869_v16 }
 0x18d   : >> { %1010 = vmatprep.subr.mxu1 %v873_v63 }
 0x18e   : >> { %940 = vmatpush1.msra.mxu0 %v872_v22  ;;  %1011 = vmatpush1.msra.mxu1 %v870_v59 }
 0x18f   : >> { %2252 = vmatmul.mubr.msk.f32.vlgmr.msra.gmra.mrb[0].mxu0 %vm919_vm8, %v743_v42  ;;  %2253 = vmatmul.mubr.msk.f32.vlgmr.msra.gmra.mrb[0].mxu1 %vm919_vm8, %v743_v42 }
 0x190   : >> { %1331 = vmatprep.mubr.f32.mxu0 %v2901_v60  ;;  %1402 = vmatprep.mubr.f32.mxu1 %v2901_v60 }
 0x198   : >> { %v917_v39 = vpop.permute.xlu0 %916 }
 0x262   : >> { %v989_v43 = vpop.f32.mrb[0].mxu0  ;;  %v1060_v35 = vpop.f32.mrb[0].mxu1 }
 0x263   : >> { %v990_v23 = vadd.f32 %v989_v43, %v917_v39  ;;  %v1061_v30 = vadd.f32 %v1060_v35, %v917_v39  ;;  %v991_v33 = vpop.f32.mrb[1].mxu0  ;;  %v1062_v8 = vpop.f32.mrb[1].mxu1 }
 0x264   : >> { %v992_v61 = vadd.f32 %v991_v33, %v917_v39  ;;  %v1063_v31 = vadd.f32 %v1062_v8, %v917_v39 }
 0x265   : >> { %v1065_v48 = vmax.f32 %v990_v23, 0.0  ;;  %v1067_v9 = vmax.f32 %v1061_v30, 0.0 }
 0x266   : >> { %v1066_v40 = vmax.f32 %v992_v61, 0.0  ;;  %v1068_v17 = vmax.f32 %v1063_v31, 0.0 }
 0x267   : >> { %v1069_v47 = vadd.f32 %v1065_v48, %v3354_v24  ;;  %v1071_v50 = vadd.f32 %v1067_v9, %v3362_v62  ;;  %v2257_v62 = vld [vmem:[%s3393_s15 + $0x8] sm:$0xff] }
 0x268   : >> { %v1070_v4 = vadd.f32 %v1066_v40, %v3357_v29  ;;  %v1072_v10 = vadd.f32 %v1068_v17, %v3365_v34 }
 0x269   : >> { %v3487_v11 = vmul.f32 %v1069_v47, %v3199_v36  ;;  %v3493_v52 = vmul.f32 %v1071_v50, %v3346_v49 }
 0x26a   : >> { %v3490_v5 = vmul.f32 %v1070_v4, %v3204_v37  ;;  %v3496_v6 = vmul.f32 %v1072_v10, %v3351_v38 }
 0x26c   : >> { %v2603_v24 = vpack.i.bf16 %v3490_v5, %v3487_v11  ;;  %v2598_v29 = vpack.i.bf16 %v3496_v6, %v3493_v52 }
 0x26e   : >> { %2604 = vrot.lane.b32.xlu0 %v2603_v24, %s2902_s23  ;;  %2594 = vrot.lane.b32.xlu1 %v2603_v24, %s2903_s24 }
 0x272   : >> { %2614 = vrot.lane.b32.xlu0 %v2603_v24, %s2904_s25  ;;  %2599 = vrot.lane.b32.xlu1 %v2598_v29, %s2903_s24  ;;  %s2911_s24 = smov 66  }
 0x276   : >> { %2624 = vrot.lane.b32.xlu0 %v2603_v24, %s2905_s12  ;;  %2609 = vrot.lane.b32.xlu1 %v2598_v29, %s2902_s23  ;;  %s2910_s23 = smov 69  }
 0x27a   : >> { %2634 = vrot.lane.b32.xlu0 %v2603_v24, %s2906_s13  ;;  %2619 = vrot.lane.b32.xlu1 %v2598_v29, %s2904_s25  ;;  %s2912_s25 = smov 63  }
 0x27e   : >> { %2644 = vrot.lane.b32.xlu0 %v2603_v24, %s2907_s14  ;;  %2629 = vrot.lane.b32.xlu1 %v2598_v29, %s2905_s12  ;;  %s2913_s12 = smov 3  }
 0x282   : >> { %2654 = vrot.lane.b32.xlu0 %v2603_v24, %s2908_s20  ;;  %2639 = vrot.lane.b32.xlu1 %v2598_v29, %s2906_s13  ;;  %s2914_s13 = smov 125  }
 0x286   : >> { %1206 = vrot.lane.b32.xlu0 %v3487_v11, %s2909_s21  ;;  %2649 = vrot.lane.b32.xlu1 %v2598_v29, %s2907_s14  ;;  %s2915_s14 = smov 65  }
 0x28a   : >> { %1210 = vrot.lane.b32.xlu0 %v3493_v52, %s2909_s21  ;;  %2659 = vrot.lane.b32.xlu1 %v2598_v29, %s2908_s20  ;;  %s2916_s20 = smov 62  }
 0x28e   : >> { %1261 = vperm.xlu0 %2592, %v2257_v62   ;;  %1208 = vrot.lane.b32.xlu1 %v3490_v5, %s2909_s21 }
 0x292   : >> { %1212 = vrot.lane.b32.xlu1 %v3496_v6, %s2909_s21  ;;  %s2917_s21 = smov 59  }
 0x2e0   : >> { %v2605_v34 = vpop.permute.xlu0 %2604  ;;  %v2595_v44 = vpop.permute.xlu1 %2594 }
 0x2e1   : >> { %v2607_v19 = vunpack.i.h.bf16 %v2605_v34  ;;  %v2606_v32 = vunpack.i.l.bf16 %v2605_v34  ;;  %v2597_v7 = vunpack.i.h.bf16 %v2595_v44  ;;  %v2596_v20 = vunpack.i.l.bf16 %v2595_v44 }
 0x2e3   : >> { %v1094_v54 = vsel %vm1091_vm9, %v2596_v20, %v2597_v7  ;;  %v1111_v28 = vsel %vm1108_vm10, %v2606_v32, %v2607_v19 }
 0x2e4   : >> { %v2615_v53 = vpop.permute.xlu0 %2614  ;;  %v2600_v58 = vpop.permute.xlu1 %2599  ;;  %v2303_v25 = vpack.c.bf16 %v1111_v28, %v1094_v54 }
 0x2e5   : >> { %v2617_v21 = vunpack.i.h.bf16 %v2615_v53  ;;  %v2616_v26 = vunpack.i.l.bf16 %v2615_v53  ;;  %v2602_v27 = vunpack.i.h.bf16 %v2600_v58  ;;  %v2601_v41 = vunpack.i.l.bf16 %v2600_v58 }
 0x2e6   : >> { %2304 = vmatprep.subr.bf16.mxu0 %v2303_v25 }
 0x2e7   : >> { %v1095_v55 = vsel %vm1091_vm9, %v2602_v27, %v2596_v20  ;;  %v1093_v16 = vsel %vm1091_vm9, %v2597_v7, %v2601_v41  ;;  %v1092_v63 = vsel %vm1091_vm9, %v2601_v41, %v2602_v27  ;;  %v1128_v59 = vsel %vm1125_vm11, %v2616_v26, %v2617_v21 }
 0x2e8   : >> { %v2625_v56 = vpop.permute.xlu0 %2624  ;;  %v2610_v46 = vpop.permute.xlu1 %2609  ;;  %vm1214_vm9 = vcmp.lt.s32.totalorder %v3140_v51, 82 }
 0x2e9   : >> { %v2627_v45 = vunpack.i.h.bf16 %v2625_v56  ;;  %v2626_v18 = vunpack.i.l.bf16 %v2625_v56  ;;  %v2612_v1 = vunpack.i.h.bf16 %v2610_v46  ;;  %v2611_v57 = vunpack.i.l.bf16 %v2610_v46 }
 0x2eb   : >> { %v1112_v42 = vsel %vm1108_vm10, %v2612_v1, %v2606_v32  ;;  %v1110_v22 = vsel %vm1108_vm10, %v2607_v19, %v2611_v57  ;;  %v1109_v39 = vsel %vm1108_vm10, %v2611_v57, %v2612_v1  ;;  %v1145_v43 = vsel %vm1142_vm12, %v2626_v18, %v2627_v45 }
 0x2ec   : >> { %v2305_v35 = vpack.c.bf16 %v1112_v42, %v1095_v55  ;;  %v2321_v23 = vpack.c.bf16 %v1110_v22, %v1093_v16  ;;  %v2635_v30 = vpop.permute.xlu0 %2634  ;;  %v2620_v33 = vpop.permute.xlu1 %2619  ;;  %v2319_v8 = vpack.c.bf16 %v1109_v39, %v1092_v63  ;;  %v2307_v61 = vpack.c.bf16 %v1145_v43, %v1128_v59 }
 0x2ed   : >> { %v2622_v31 = vunpack.i.h.bf16 %v2620_v33  ;;  %v2621_v48 = vunpack.i.l.bf16 %v2620_v33  ;;  %v2637_v50 = vunpack.i.h.bf16 %v2635_v30  ;;  %v2636_v4 = vunpack.i.l.bf16 %v2635_v30 }
 0x2ee   : >> { %2306 = vmatpush1.bf16.msra.mxu0 %v2305_v35  ;;  %2320 = vmatprep.subr.bf16.mxu1 %v2319_v8  ;;  %vm1435_vm10 = vcmp.lt.s32.totalorder %v3140_v51, 69 }
 0x2ef   : >> { %2308 = vmatprep.subr.bf16.mxu0 %v2307_v61  ;;  %2322 = vmatpush1.bf16.msra.mxu1 %v2321_v23  ;;  %v1129_v10 = vsel %vm1125_vm11, %v2622_v31, %v2616_v26  ;;  %v1127_v24 = vsel %vm1125_vm11, %v2617_v21, %v2621_v48  ;;  %v1126_v34 = vsel %vm1125_vm11, %v2621_v48, %v2622_v31  ;;  %vm1452_vm11 = vcmp.lt.s32.totalorder %v3140_v51, 66 }
 0x2f0   : >> { %v2645_v9 = vpop.permute.xlu0 %2644  ;;  %v2630_v40 = vpop.permute.xlu1 %2629  ;;  %v1166_v53 = vsel %vm1163_vm13, %v2636_v4, %v2637_v50 }
 0x2f1   : >> { %v2632_v17 = vunpack.i.h.bf16 %v2630_v40  ;;  %v2631_v47 = vunpack.i.l.bf16 %v2630_v40  ;;  %v2647_v16 = vunpack.i.h.bf16 %v2645_v9  ;;  %v2646_v63 = vunpack.i.l.bf16 %v2645_v9 }
 0x2f3   : >> { %v1146_v29 = vsel %vm1142_vm12, %v2632_v17, %v2626_v18  ;;  %v1144_v62 = vsel %vm1142_vm12, %v2627_v45, %v2631_v47  ;;  %v1143_v44 = vsel %vm1142_vm12, %v2631_v47, %v2632_v17  ;;  %v2313_v45 = vpack.c.bf16 %v1166_v53, %v3487_v11 }
 0x2f4   : >> { %v2309_v19 = vpack.c.bf16 %v1146_v29, %v1129_v10  ;;  %v2325_v32 = vpack.c.bf16 %v1144_v62, %v1127_v24  ;;  %v2640_v7 = vpop.permute.xlu1 %2639  ;;  %v2323_v20 = vpack.c.bf16 %v1143_v44, %v1126_v34  ;;  %v2655_v58 = vpop.permute.xlu0 %2654  ;;  %v1183_v31 = vsel %vm1180_vm15, %v2646_v63, %v2647_v16  ;;  %v2255_v62 = vld [vmem:[%s3467_s22 + $0x8] sm:$0xff] }
 0x2f5   : >> { %v2642_v54 = vunpack.i.h.bf16 %v2640_v7  ;;  %v2641_v28 = vunpack.i.l.bf16 %v2640_v7  ;;  %v2657_v18 = vunpack.i.h.bf16 %v2655_v58  ;;  %v2656_v1 = vunpack.i.l.bf16 %v2655_v58 }
 0x2f6   : >> { %2310 = vmatpush1.bf16.msra.mxu0 %v2309_v19  ;;  %2324 = vmatprep.subr.bf16.mxu1 %v2323_v20  ;;  %vm1469_vm12 = vcmp.lt.s32.totalorder %v3140_v51, 63 }
 0x2f7   : >> { %v1164_v25 = vsel %vm1163_vm13, %v2641_v28, %v2642_v54  ;;  %2326 = vmatpush1.bf16.msra.mxu1 %v2325_v32  ;;  %v1165_v21 = vsel %vm1163_vm13, %v2637_v50, %v2641_v28  ;;  %v1167_v26 = vsel %vm1163_vm13, %v2642_v54, %v2636_v4  ;;  %v1200_v43 = vsel %vm1197_vm14, %v2656_v1, %v2657_v18 }
 0x2f8   : >> { %v2329_v27 = vpack.c.bf16 %v1164_v25, %v3493_v52  ;;  %v2650_v41 = vpop.permute.xlu1 %2649  ;;  %v2311_v56 = vpack.c.bf16 %v1165_v21, %v3490_v5  ;;  %v2327_v46 = vpack.c.bf16 %v1167_v26, %v3496_v6  ;;  %v1207_v59 = vpop.permute.xlu0 %1206  ;;  %v2317_v47 = vpack.c.bf16 %v1200_v43, %v1183_v31 }
 0x2f9   : >> { %v2652_v57 = vunpack.i.h.bf16 %v2650_v41  ;;  %v2651_v55 = vunpack.i.l.bf16 %v2650_v41  ;;  %vm1486_vm13 = vcmp.lt.s32.totalorder %v3140_v51, 3 }
 0x2fa   : >> { %2312 = vmatprep.subr.bf16.mxu0 %v2311_v56  ;;  %2328 = vmatprep.subr.bf16.mxu1 %v2327_v46 }
 0x2fb   : >> { %2314 = vmatpush1.bf16.msra.mxu0 %v2313_v45  ;;  %2330 = vmatpush1.bf16.msra.mxu1 %v2329_v27  ;;  %v1181_v35 = vsel %vm1180_vm15, %v2651_v55, %v2652_v57  ;;  %v1182_v23 = vsel %vm1180_vm15, %v2647_v16, %v2651_v55  ;;  %v1184_v8 = vsel %vm1180_vm15, %v2652_v57, %v2646_v63  ;;  %vm1524_vm15 = vcmp.lt.s32.totalorder %v3140_v51, 65 }
 0x2fc   : >> { %v2660_v42 = vpop.permute.xlu1 %2659  ;;  %v1211_v50 = vpop.permute.xlu0 %1210 }
 0x2fd   : >> { %v2662_v22 = vunpack.i.h.bf16 %v2660_v42  ;;  %v2661_v39 = vunpack.i.l.bf16 %v2660_v42 }
 0x2ff   : >> { %v1198_v30 = vsel %vm1197_vm14, %v2661_v39, %v2662_v22  ;;  %v1199_v33 = vsel %vm1197_vm14, %v2657_v18, %v2661_v39  ;;  %v1201_v61 = vsel %vm1197_vm14, %v2662_v22, %v2656_v1  ;;  %vm1507_vm14 = vcmp.lt.s32.totalorder %v3140_v51, 125 }
 0x300   : >> { %v2333_v48 = vpack.c.bf16 %v1198_v30, %v1181_v35  ;;  %v1209_v9 = vpop.permute.xlu1 %1208  ;;  %v2315_v40 = vpack.c.bf16 %v1199_v33, %v1182_v23  ;;  %v2331_v17 = vpack.c.bf16 %v1201_v61, %v1184_v8 }
 0x301   : >> { %v1216_v4 = vsel %vm1214_vm9, %v1209_v9, %v1211_v50  ;;  %v1217_v34 = vsel %vm1214_vm9, %v1207_v59, %v1209_v9 }
 0x302   : >> { %2316 = vmatprep.subr.bf16.mxu0 %v2315_v40  ;;  %2332 = vmatprep.subr.bf16.mxu1 %v2331_v17 }
 0x303   : >> { %2318 = vmatpush1.bf16.msra.mxu0 %v2317_v47  ;;  %2334 = vmatpush1.bf16.msra.mxu1 %v2333_v48 }
 0x304   : >> { %v1213_v10 = vpop.permute.xlu1 %1212  ;;  %1283 = vmatprep.subr.mxu0 %v1216_v4 }
 0x305   : >> { %v1215_v24 = vsel %vm1214_vm9, %v1211_v50, %v1213_v10  ;;  %v1218_v29 = vsel %vm1214_vm9, %v1213_v10, %v1207_v59  ;;  %vm1541_vm9 = vcmp.lt.s32.totalorder %v3140_v51, 62 }
 0x306   : >> { %1354 = vmatprep.subr.mxu1 %v1218_v29 }
 0x307   : >> { %1284 = vmatpush1.msra.mxu0 %v1217_v34  ;;  %1355 = vmatpush1.msra.mxu1 %v1215_v24 }
 0x308   : >> { %2258 = vmatmul.mubr.msk.f32.vlgmr.msra.gmra.mrb[2].mxu0 %vm919_vm8, %v2255_v62  ;;  %2259 = vmatmul.mubr.msk.f32.vlgmr.msra.gmra.mrb[2].mxu1 %vm919_vm8, %v2255_v62 }
 0x309   : >> { %1675 = vmatprep.mubr.f32.mxu0 %v2901_v60  ;;  %1746 = vmatprep.mubr.f32.mxu1 %v2901_v60 }
 0x30d   : >> { %v1262_v44 = vpop.permute.xlu0 %1261 }
 0x3db   : >> { %v1333_v19 = vpop.f32.mrb[2].mxu0  ;;  %v1404_v32 = vpop.f32.mrb[2].mxu1 }
 0x3dc   : >> { %v1334_v7 = vadd.f32 %v1333_v19, %v1262_v44  ;;  %v1405_v20 = vadd.f32 %v1404_v32, %v1262_v44  ;;  %v1335_v54 = vpop.f32.mrb[3].mxu0  ;;  %v1406_v28 = vpop.f32.mrb[3].mxu1 }
 0x3dd   : >> { %v1336_v53 = vadd.f32 %v1335_v54, %v1262_v44  ;;  %v1407_v58 = vadd.f32 %v1406_v28, %v1262_v44 }
 0x3de   : >> { %v1409_v25 = vmax.f32 %v1334_v7, 0.0  ;;  %v1411_v21 = vmax.f32 %v1405_v20, 0.0 }
 0x3df   : >> { %v1410_v26 = vmax.f32 %v1336_v53, 0.0  ;;  %v1412_v27 = vmax.f32 %v1407_v58, 0.0 }
 0x3e0   : >> { %v1413_v41 = vadd.f32 %v1409_v25, %v3487_v11  ;;  %v1415_v56 = vadd.f32 %v1411_v21, %v3493_v52  ;;  %v2263_v52 = vld [vmem:[%s3393_s15 + $0x10] sm:$0xff] }
 0x3e1   : >> { %v1414_v46 = vadd.f32 %v1410_v26, %v3490_v5  ;;  %v1416_v45 = vadd.f32 %v1412_v27, %v3496_v6 }
 0x3e2   : >> { %v3585_v18 = vmul.f32 %v1413_v41, %v3199_v36  ;;  %v3588_v1 = vmul.f32 %v1415_v56, %v3346_v49 }
 0x3e3   : >> { %v3591_v57 = vmul.f32 %v1414_v46, %v3204_v37  ;;  %v3594_v55 = vmul.f32 %v1416_v45, %v3351_v38 }
 0x3e5   : >> { %v2663_v11 = vpack.i.bf16 %v3591_v57, %v3585_v18  ;;  %v2668_v5 = vpack.i.bf16 %v3594_v55, %v3588_v1 }
 0x3e7   : >> { %2664 = vrot.lane.b32.xlu1 %v2663_v11, %s2910_s23  ;;  %2669 = vrot.lane.b32.xlu0 %v2668_v5, %s2910_s23 }
 0x3eb   : >> { %2674 = vrot.lane.b32.xlu1 %v2663_v11, %s2911_s24  ;;  %2679 = vrot.lane.b32.xlu0 %v2668_v5, %s2911_s24 }
 0x3ef   : >> { %2684 = vrot.lane.b32.xlu1 %v2663_v11, %s2912_s25  ;;  %2689 = vrot.lane.b32.xlu0 %v2668_v5, %s2912_s25 }
 0x3f3   : >> { %2694 = vrot.lane.b32.xlu1 %v2663_v11, %s2913_s12  ;;  %2699 = vrot.lane.b32.xlu0 %v2668_v5, %s2913_s12 }
 0x3f7   : >> { %2704 = vrot.lane.b32.xlu1 %v2663_v11, %s2914_s13  ;;  %2709 = vrot.lane.b32.xlu0 %v2668_v5, %s2914_s13 }
 0x3fb   : >> { %2714 = vrot.lane.b32.xlu1 %v2663_v11, %s2915_s14  ;;  %2719 = vrot.lane.b32.xlu0 %v2668_v5, %s2915_s14 }
 0x3ff   : >> { %2724 = vrot.lane.b32.xlu1 %v2663_v11, %s2916_s20  ;;  %2729 = vrot.lane.b32.xlu0 %v2668_v5, %s2916_s20 }
 0x403   : >> { %1550 = vrot.lane.b32.xlu1 %v3585_v18, %s2917_s21  ;;  %1552 = vrot.lane.b32.xlu0 %v3591_v57, %s2917_s21 }
 0x407   : >> { %1554 = vrot.lane.b32.xlu1 %v3588_v1, %s2917_s21  ;;  %1556 = vrot.lane.b32.xlu0 %v3594_v55, %s2917_s21 }
 0x40b   : >> { %1605 = vperm.xlu1 %2733, %v2263_v52  }
 0x459   : >> { %v2665_v6 = vpop.permute.xlu1 %2664  ;;  %v2670_v16 = vpop.permute.xlu0 %2669 }
 0x45a   : >> { %v2667_v63 = vunpack.i.h.bf16 %v2665_v6  ;;  %v2666_v59 = vunpack.i.l.bf16 %v2665_v6  ;;  %v2672_v42 = vunpack.i.h.bf16 %v2670_v16  ;;  %v2671_v22 = vunpack.i.l.bf16 %v2670_v16 }
 0x45c   : >> { %v1439_v8 = vsel %vm1435_vm10, %v2672_v42, %v2666_v59  ;;  %v1437_v61 = vsel %vm1435_vm10, %v2667_v63, %v2671_v22  ;;  %v1438_v31 = vsel %vm1435_vm10, %v2666_v59, %v2667_v63  ;;  %v1436_v48 = vsel %vm1435_vm10, %v2671_v22, %v2672_v42 }
 0x45d   : >> { %v2675_v39 = vpop.permute.xlu1 %2674  ;;  %v2680_v43 = vpop.permute.xlu0 %2679  ;;  %vm1558_vm10 = vcmp.lt.s32.totalorder %v3140_v51, 59 }
 0x45e   : >> { %v2677_v35 = vunpack.i.h.bf16 %v2675_v39  ;;  %v2676_v23 = vunpack.i.l.bf16 %v2675_v39  ;;  %v2682_v30 = vunpack.i.h.bf16 %v2680_v43  ;;  %v2681_v33 = vunpack.i.l.bf16 %v2680_v43 }
 0x460   : >> { %v1456_v9 = vsel %vm1452_vm11, %v2682_v30, %v2676_v23  ;;  %v1454_v40 = vsel %vm1452_vm11, %v2677_v35, %v2681_v33  ;;  %v1455_v17 = vsel %vm1452_vm11, %v2676_v23, %v2677_v35  ;;  %v1453_v47 = vsel %vm1452_vm11, %v2681_v33, %v2682_v30 }
 0x461   : >> { %v2337_v50 = vpack.c.bf16 %v1456_v9, %v1439_v8  ;;  %v2353_v4 = vpack.c.bf16 %v1454_v40, %v1437_v61  ;;  %v2685_v10 = vpop.permute.xlu1 %2684  ;;  %v2690_v24 = vpop.permute.xlu0 %2689  ;;  %v2335_v29 = vpack.c.bf16 %v1455_v17, %v1438_v31  ;;  %v2351_v62 = vpack.c.bf16 %v1453_v47, %v1436_v48 }
 0x462   : >> { %v2687_v34 = vunpack.i.h.bf16 %v2685_v10  ;;  %v2686_v44 = vunpack.i.l.bf16 %v2685_v10  ;;  %v2692_v19 = vunpack.i.h.bf16 %v2690_v24  ;;  %v2691_v32 = vunpack.i.l.bf16 %v2690_v24 }
 0x463   : >> { %2336 = vmatprep.subr.bf16.mxu0 %v2335_v29  ;;  %2352 = vmatprep.subr.bf16.mxu1 %v2351_v62 }
 0x464   : >> { %2338 = vmatpush1.bf16.msra.mxu0 %v2337_v50  ;;  %2354 = vmatpush1.bf16.msra.mxu1 %v2353_v4  ;;  %v1473_v25 = vsel %vm1469_vm12, %v2692_v19, %v2686_v44  ;;  %v1471_v21 = vsel %vm1469_vm12, %v2687_v34, %v2691_v32  ;;  %v1472_v26 = vsel %vm1469_vm12, %v2686_v44, %v2687_v34 }
 0x465   : >> { %v2695_v7 = vpop.permute.xlu1 %2694  ;;  %v2700_v20 = vpop.permute.xlu0 %2699  ;;  %v1470_v27 = vsel %vm1469_vm12, %v2691_v32, %v2692_v19 }
 0x466   : >> { %v2697_v54 = vunpack.i.h.bf16 %v2695_v7  ;;  %v2696_v28 = vunpack.i.l.bf16 %v2695_v7  ;;  %v2702_v53 = vunpack.i.h.bf16 %v2700_v20  ;;  %v2701_v58 = vunpack.i.l.bf16 %v2700_v20 }
 0x468   : >> { %v1490_v41 = vsel %vm1486_vm13, %v2702_v53, %v2696_v28  ;;  %v1488_v56 = vsel %vm1486_vm13, %v2697_v54, %v2701_v58  ;;  %v1489_v46 = vsel %vm1486_vm13, %v2696_v28, %v2697_v54  ;;  %v1487_v45 = vsel %vm1486_vm13, %v2701_v58, %v2702_v53 }
 0x469   : >> { %v2341_v11 = vpack.c.bf16 %v1490_v41, %v1473_v25  ;;  %v2357_v5 = vpack.c.bf16 %v1488_v56, %v1471_v21  ;;  %v2705_v52 = vpop.permute.xlu1 %2704  ;;  %v2710_v6 = vpop.permute.xlu0 %2709  ;;  %v2339_v16 = vpack.c.bf16 %v1489_v46, %v1472_v26  ;;  %v2355_v63 = vpack.c.bf16 %v1487_v45, %v1470_v27 }
 0x46a   : >> { %v2707_v59 = vunpack.i.h.bf16 %v2705_v52  ;;  %v2706_v42 = vunpack.i.l.bf16 %v2705_v52  ;;  %v2712_v22 = vunpack.i.h.bf16 %v2710_v6  ;;  %v2711_v39 = vunpack.i.l.bf16 %v2710_v6  ;;  %v2261_v52 = vld [vmem:[%s3467_s22 + $0x10] sm:$0xff] }
 0x46b   : >> { %2340 = vmatprep.subr.bf16.mxu0 %v2339_v16  ;;  %2356 = vmatprep.subr.bf16.mxu1 %v2355_v63 }
 0x46c   : >> { %v1510_v43 = vsel %vm1507_vm14, %v2706_v42, %v2707_v59  ;;  %v1508_v35 = vsel %vm1507_vm14, %v2711_v39, %v2712_v22  ;;  %2342 = vmatpush1.bf16.msra.mxu0 %v2341_v11  ;;  %2358 = vmatpush1.bf16.msra.mxu1 %v2357_v5  ;;  %v1509_v23 = vsel %vm1507_vm14, %v2707_v59, %v2711_v39 }
 0x46d   : >> { %v2345_v30 = vpack.c.bf16 %v1510_v43, %v3585_v18  ;;  %v2715_v33 = vpop.permute.xlu1 %2714  ;;  %v2720_v8 = vpop.permute.xlu0 %2719  ;;  %v2343_v61 = vpack.c.bf16 %v1509_v23, %v3591_v57  ;;  %v1511_v31 = vsel %vm1507_vm14, %v2712_v22, %v2706_v42  ;;  %v2361_v48 = vpack.c.bf16 %v1508_v35, %v3588_v1 }
 0x46e   : >> { %v2717_v9 = vunpack.i.h.bf16 %v2715_v33  ;;  %v2716_v40 = vunpack.i.l.bf16 %v2715_v33  ;;  %v2722_v17 = vunpack.i.h.bf16 %v2720_v8  ;;  %v2721_v47 = vunpack.i.l.bf16 %v2720_v8 }
 0x46f   : >> { %2344 = vmatprep.subr.bf16.mxu0 %v2343_v61  ;;  %v2359_v50 = vpack.c.bf16 %v1511_v31, %v3594_v55 }
 0x470   : >> { %2346 = vmatpush1.bf16.msra.mxu0 %v2345_v30  ;;  %v1527_v44 = vsel %vm1524_vm15, %v2716_v40, %v2717_v9  ;;  %v1525_v19 = vsel %vm1524_vm15, %v2721_v47, %v2722_v17  ;;  %v1526_v32 = vsel %vm1524_vm15, %v2717_v9, %v2721_v47  ;;  %v1528_v7 = vsel %vm1524_vm15, %v2722_v17, %v2716_v40 }
 0x471   : >> { %2360 = vmatprep.subr.bf16.mxu1 %v2359_v50  ;;  %v2725_v4 = vpop.permute.xlu1 %2724  ;;  %v2730_v10 = vpop.permute.xlu0 %2729 }
 0x472   : >> { %2362 = vmatpush1.bf16.msra.mxu1 %v2361_v48  ;;  %v2727_v24 = vunpack.i.h.bf16 %v2725_v4  ;;  %v2726_v29 = vunpack.i.l.bf16 %v2725_v4  ;;  %v2732_v62 = vunpack.i.h.bf16 %v2730_v10  ;;  %v2731_v34 = vunpack.i.l.bf16 %v2730_v10 }
 0x474   : >> { %v1544_v20 = vsel %vm1541_vm9, %v2726_v29, %v2727_v24  ;;  %v1542_v54 = vsel %vm1541_vm9, %v2731_v34, %v2732_v62  ;;  %v1543_v28 = vsel %vm1541_vm9, %v2727_v24, %v2731_v34  ;;  %v1545_v53 = vsel %vm1541_vm9, %v2732_v62, %v2726_v29 }
 0x475   : >> { %v2349_v58 = vpack.c.bf16 %v1544_v20, %v1527_v44  ;;  %v2365_v25 = vpack.c.bf16 %v1542_v54, %v1525_v19  ;;  %v1551_v21 = vpop.permute.xlu1 %1550  ;;  %v1553_v26 = vpop.permute.xlu0 %1552  ;;  %v2347_v27 = vpack.c.bf16 %v1543_v28, %v1526_v32  ;;  %v2363_v41 = vpack.c.bf16 %v1545_v53, %v1528_v7 }
 0x476   : >> { %v1561_v6 = vsel %vm1558_vm10, %v1551_v21, %v1553_v26 }
 0x477   : >> { %2348 = vmatprep.subr.bf16.mxu0 %v2347_v27  ;;  %2364 = vmatprep.subr.bf16.mxu1 %v2363_v41 }
 0x478   : >> { %2350 = vmatpush1.bf16.msra.mxu0 %v2349_v58  ;;  %2366 = vmatpush1.bf16.msra.mxu1 %v2365_v25 }
 0x479   : >> { %v1555_v56 = vpop.permute.xlu1 %1554  ;;  %v1557_v46 = vpop.permute.xlu0 %1556 }
 0x47a   : >> { %v1559_v45 = vsel %vm1558_vm10, %v1555_v56, %v1557_v46  ;;  %v1560_v11 = vsel %vm1558_vm10, %v1553_v26, %v1555_v56  ;;  %v1562_v5 = vsel %vm1558_vm10, %v1557_v46, %v1551_v21 }
 0x47b   : >> { %1627 = vmatprep.subr.mxu0 %v1560_v11  ;;  %1698 = vmatprep.subr.mxu1 %v1562_v5 }
 0x47c   : >> { %1628 = vmatpush1.msra.mxu0 %v1561_v6  ;;  %1699 = vmatpush1.msra.mxu1 %v1559_v45 }
 0x47d   : >> { %2264 = vmatmul.mubr.msk.f32.vlgmr.msra.gmra.mrb[4].mxu0 %vm919_vm8, %v2261_v52  ;;  %2265 = vmatmul.mubr.msk.f32.vlgmr.msra.gmra.mrb[4].mxu1 %vm919_vm8, %v2261_v52 }
 0x47e   : >> { %2002 = vmatprep.mubr.f32.mxu0 %v2901_v60  ;;  %2073 = vmatprep.mubr.f32.mxu1 %v2901_v60 }
 0x48a   : >> { %v1606_v16 = vpop.permute.xlu1 %1605 }
 0x550   : >> { %v1677_v63 = vpop.f32.mrb[4].mxu0  ;;  %v1748_v59 = vpop.f32.mrb[4].mxu1 }
 0x551   : >> { %v1678_v42 = vadd.f32 %v1677_v63, %v1606_v16  ;;  %v1749_v22 = vadd.f32 %v1748_v59, %v1606_v16  ;;  %v1679_v39 = vpop.f32.mrb[5].mxu0  ;;  %v1750_v43 = vpop.f32.mrb[5].mxu1 }
 0x552   : >> { %v1680_v35 = vadd.f32 %v1679_v39, %v1606_v16  ;;  %v1751_v23 = vadd.f32 %v1750_v43, %v1606_v16 }
 0x553   : >> { %v1753_v30 = vmax.f32 %v1678_v42, 0.0  ;;  %v1755_v33 = vmax.f32 %v1749_v22, 0.0 }
 0x554   : >> { %v1754_v8 = vmax.f32 %v1680_v35, 0.0  ;;  %v1756_v61 = vmax.f32 %v1751_v23, 0.0 }
 0x555   : >> { %v1757_v31 = vadd.f32 %v1753_v30, %v3585_v18  ;;  %v1759_v48 = vadd.f32 %v1755_v33, %v3588_v1 }
 0x556   : >> { %v1758_v9 = vadd.f32 %v1754_v8, %v3591_v57  ;;  %v1760_v60 = vadd.f32 %v1756_v61, %v3594_v55 }
 0x557   : >> { %v3635_v40 = vmul.f32 %v1757_v31, %v3199_v36  ;;  %v3638_v17 = vmul.f32 %v1759_v48, %v3346_v49 }
 0x558   : >> { %v3641_v47 = vmul.f32 %v1758_v9, %v3204_v37  ;;  %v3644_v50 = vmul.f32 %v1760_v60, %v3351_v38 }
 0x55a   : >> { %v2734_v18 = vpack.i.bf16 %v3641_v47, %v3635_v40  ;;  %v2739_v1 = vpack.i.bf16 %v3644_v50, %v3638_v17 }
 0x55c   : >> { %2735 = vrot.lane.b32.xlu0 %v2734_v18, %s2886_s18  ;;  %2740 = vrot.lane.b32.xlu1 %v2739_v1, %s2886_s18 }
 0x560   : >> { %2745 = vrot.lane.b32.xlu0 %v2734_v18, %s2889_s26  ;;  %2750 = vrot.lane.b32.xlu1 %v2739_v1, %s2889_s26 }
 0x564   : >> { %2755 = vrot.lane.b32.xlu0 %v2734_v18, %s2891_s28  ;;  %2760 = vrot.lane.b32.xlu1 %v2739_v1, %s2891_s28  ;;  %s2080_s28 = scalar_lea.vmem %s3797_s6, %s2882_s17 }
 0x565   : >> { %v2081_v57 = vld [vmem:[%s2080_s28] sm:$0x1] }
 0x568   : >> { %2765 = vrot.lane.b32.xlu0 %v2734_v18, %s2893_s29  ;;  %2770 = vrot.lane.b32.xlu1 %v2739_v1, %s2893_s29 }
 0x56c   : >> { %2775 = vrot.lane.b32.xlu0 %v2734_v18, %s2895_s30  ;;  %2780 = vrot.lane.b32.xlu1 %v2739_v1, %s2895_s30 }
 0x570   : >> { %2785 = vrot.lane.b32.xlu0 %v2734_v18, %s2898_s9  ;;  %2790 = vrot.lane.b32.xlu1 %v2739_v1, %s2898_s9  ;;  %s1897_s9 = scalar_lea.vmem %s3796_s5, %s3049_s19 }
 0x574   : >> { %2795 = vrot.lane.b32.xlu0 %v2734_v18, %s2899_s10  ;;  %2800 = vrot.lane.b32.xlu1 %v2739_v1, %s2899_s10 }
 0x578   : >> { %1881 = vrot.lane.b32.xlu0 %v3635_v40, %s2900_s11  ;;  %1883 = vrot.lane.b32.xlu1 %v3641_v47, %s2900_s11 }
 0x57c   : >> { %1885 = vrot.lane.b32.xlu0 %v3638_v17, %s2900_s11  ;;  %1887 = vrot.lane.b32.xlu1 %v3644_v50, %s2900_s11 }
 0x580   : >> { %2084 = vperm.xlu0 %2592, %v2081_v57  }
 0x5ce   : >> { %v2736_v55 = vpop.permute.xlu0 %2735  ;;  %v2741_v4 = vpop.permute.xlu1 %2740 }
 0x5cf   : >> { %v2738_v10 = vunpack.i.h.bf16 %v2736_v55  ;;  %v2737_v24 = vunpack.i.l.bf16 %v2736_v55  ;;  %v2743_v29 = vunpack.i.h.bf16 %v2741_v4  ;;  %v2742_v62 = vunpack.i.l.bf16 %v2741_v4 }
 0x5d1   : >> { %v1776_v54 = vsel %vm362_vm0, %v2743_v29, %v2737_v24  ;;  %v1774_v28 = vsel %vm362_vm0, %v2738_v10, %v2742_v62  ;;  %v1775_v53 = vsel %vm362_vm0, %v2737_v24, %v2738_v10  ;;  %v1773_v58 = vsel %vm362_vm0, %v2742_v62, %v2743_v29 }
 0x5d2   : >> { %v2746_v34 = vpop.permute.xlu0 %2745  ;;  %v2751_v44 = vpop.permute.xlu1 %2750 }
 0x5d3   : >> { %v2748_v19 = vunpack.i.h.bf16 %v2746_v34  ;;  %v2747_v32 = vunpack.i.l.bf16 %v2746_v34  ;;  %v2753_v7 = vunpack.i.h.bf16 %v2751_v44  ;;  %v2752_v20 = vunpack.i.l.bf16 %v2751_v44 }
 0x5d5   : >> { %v1792_v25 = vsel %vm404_vm1, %v2753_v7, %v2747_v32  ;;  %v1790_v21 = vsel %vm404_vm1, %v2748_v19, %v2752_v20  ;;  %v1791_v26 = vsel %vm404_vm1, %v2747_v32, %v2748_v19  ;;  %v1789_v27 = vsel %vm404_vm1, %v2752_v20, %v2753_v7 }
 0x5d6   : >> { %v2369_v41 = vpack.c.bf16 %v1792_v25, %v1776_v54  ;;  %v2385_v56 = vpack.c.bf16 %v1790_v21, %v1774_v28  ;;  %v2756_v46 = vpop.permute.xlu0 %2755  ;;  %v2761_v45 = vpop.permute.xlu1 %2760  ;;  %v2367_v11 = vpack.c.bf16 %v1791_v26, %v1775_v53  ;;  %v2383_v5 = vpack.c.bf16 %v1789_v27, %v1773_v58 }
 0x5d7   : >> { %v2758_v52 = vunpack.i.h.bf16 %v2756_v46  ;;  %v2757_v6 = vunpack.i.l.bf16 %v2756_v46  ;;  %v2763_v16 = vunpack.i.h.bf16 %v2761_v45  ;;  %v2762_v63 = vunpack.i.l.bf16 %v2761_v45 }
 0x5d8   : >> { %2368 = vmatprep.subr.bf16.mxu0 %v2367_v11  ;;  %2384 = vmatprep.subr.bf16.mxu1 %v2383_v5 }
 0x5d9   : >> { %2370 = vmatpush1.bf16.msra.mxu0 %v2369_v41  ;;  %2386 = vmatpush1.bf16.msra.mxu1 %v2385_v56  ;;  %v1808_v23 = vsel %vm445_vm2, %v2763_v16, %v2757_v6  ;;  %v1806_v30 = vsel %vm445_vm2, %v2758_v52, %v2762_v63  ;;  %v1807_v33 = vsel %vm445_vm2, %v2757_v6, %v2758_v52 }
 0x5da   : >> { %v2766_v59 = vpop.permute.xlu0 %2765  ;;  %v2771_v42 = vpop.permute.xlu1 %2770  ;;  %v1805_v8 = vsel %vm445_vm2, %v2762_v63, %v2763_v16 }
 0x5db   : >> { %v2768_v22 = vunpack.i.h.bf16 %v2766_v59  ;;  %v2767_v39 = vunpack.i.l.bf16 %v2766_v59  ;;  %v2773_v43 = vunpack.i.h.bf16 %v2771_v42  ;;  %v2772_v35 = vunpack.i.l.bf16 %v2771_v42 }
 0x5dd   : >> { %v1824_v61 = vsel %vm486_vm3, %v2773_v43, %v2767_v39  ;;  %v1822_v31 = vsel %vm486_vm3, %v2768_v22, %v2772_v35  ;;  %v1823_v48 = vsel %vm486_vm3, %v2767_v39, %v2768_v22  ;;  %v1821_v9 = vsel %vm486_vm3, %v2772_v35, %v2773_v43 }
 0x5de   : >> { %v2373_v60 = vpack.c.bf16 %v1824_v61, %v1808_v23  ;;  %v2389_v18 = vpack.c.bf16 %v1822_v31, %v1806_v30  ;;  %v2776_v1 = vpop.permute.xlu0 %2775  ;;  %v2781_v57 = vpop.permute.xlu1 %2780  ;;  %v2371_v55 = vpack.c.bf16 %v1823_v48, %v1807_v33  ;;  %v2387_v4 = vpack.c.bf16 %v1821_v9, %v1805_v8  ;;  %v1898_v31 = vld [vmem:[%s1897_s9] sm:$0xff] }
 0x5df   : >> { %v2778_v10 = vunpack.i.h.bf16 %v2776_v1  ;;  %v2777_v24 = vunpack.i.l.bf16 %v2776_v1  ;;  %v2783_v29 = vunpack.i.h.bf16 %v2781_v57  ;;  %v2782_v62 = vunpack.i.l.bf16 %v2781_v57 }
 0x5e0   : >> { %2372 = vmatprep.subr.bf16.mxu0 %v2371_v55  ;;  %2388 = vmatprep.subr.bf16.mxu1 %v2387_v4 }
 0x5e1   : >> { %v1843_v34 = vsel %vm555_vm4, %v2777_v24, %v2778_v10  ;;  %v1841_v44 = vsel %vm555_vm4, %v2782_v62, %v2783_v29  ;;  %2374 = vmatpush1.bf16.msra.mxu0 %v2373_v60  ;;  %2390 = vmatpush1.bf16.msra.mxu1 %v2389_v18  ;;  %v1842_v19 = vsel %vm555_vm4, %v2778_v10, %v2782_v62  ;;  %v2103_v62 = vstv %s2882_s17  ;;  %s333_s17 = sadd.s32 1, %s2882_s17  }
 0x5e2   : >> { %v2377_v32 = vpack.c.bf16 %v1843_v34, %v3635_v40  ;;  %v2786_v7 = vpop.permute.xlu0 %2785  ;;  %v2791_v20 = vpop.permute.xlu1 %2790  ;;  %v2375_v54 = vpack.c.bf16 %v1842_v19, %v3641_v47  ;;  %v1844_v28 = vsel %vm555_vm4, %v2783_v29, %v2777_v24  ;;  %v2393_v53 = vpack.c.bf16 %v1841_v44, %v3638_v17  ;;  %p330_p4 = scmp.ge.s32.totalorder %s333_s17, 7  }
 0x5e3   : >> { %v2788_v58 = vunpack.i.h.bf16 %v2786_v7  ;;  %v2787_v25 = vunpack.i.l.bf16 %v2786_v7  ;;  %v2793_v21 = vunpack.i.h.bf16 %v2791_v20  ;;  %v2792_v26 = vunpack.i.l.bf16 %v2791_v20 }
 0x5e4   : >> { %2376 = vmatprep.subr.bf16.mxu0 %v2375_v54  ;;  %v2391_v27 = vpack.c.bf16 %v1844_v28, %v3644_v50  ;;  %vm2104_vm0 = vcmp.eq.s32.totalorder %v2977_v2, %v2103_v62 }
 0x5e5   : >> { %2378 = vmatpush1.bf16.msra.mxu0 %v2377_v32  ;;  %v1859_v11 = vsel %vm596_vm5, %v2787_v25, %v2788_v58  ;;  %v1857_v17 = vsel %vm596_vm5, %v2792_v26, %v2793_v21  ;;  %v1858_v5 = vsel %vm596_vm5, %v2788_v58, %v2792_v26  ;;  %v1860_v50 = vsel %vm596_vm5, %v2793_v21, %v2787_v25 }
 0x5e6   : >> { %2392 = vmatprep.subr.bf16.mxu1 %v2391_v27  ;;  %v2796_v41 = vpop.permute.xlu0 %2795  ;;  %v2801_v40 = vpop.permute.xlu1 %2800 }
 0x5e7   : >> { %2394 = vmatpush1.bf16.msra.mxu1 %v2393_v53  ;;  %v2798_v56 = vunpack.i.h.bf16 %v2796_v41  ;;  %v2797_v46 = vunpack.i.l.bf16 %v2796_v41  ;;  %v2803_v47 = vunpack.i.h.bf16 %v2801_v40  ;;  %v2802_v45 = vunpack.i.l.bf16 %v2801_v40 }
 0x5e9   : >> { %v1875_v52 = vsel %vm637_vm6, %v2797_v46, %v2798_v56  ;;  %v1873_v6 = vsel %vm637_vm6, %v2802_v45, %v2803_v47  ;;  %v1874_v16 = vsel %vm637_vm6, %v2798_v56, %v2802_v45  ;;  %v1876_v63 = vsel %vm637_vm6, %v2803_v47, %v2797_v46 }
 0x5ea   : >> { %v2381_v59 = vpack.c.bf16 %v1875_v52, %v1859_v11  ;;  %v2397_v42 = vpack.c.bf16 %v1873_v6, %v1857_v17  ;;  %v1882_v22 = vpop.permute.xlu0 %1881  ;;  %v1884_v39 = vpop.permute.xlu1 %1883  ;;  %v2379_v43 = vpack.c.bf16 %v1874_v16, %v1858_v5  ;;  %v2395_v35 = vpack.c.bf16 %v1876_v63, %v1860_v50 }
 0x5eb   : >> { %v1891_v48 = vsel %vm678_vm7, %v1882_v22, %v1884_v39 }
 0x5ec   : >> { %2380 = vmatprep.subr.bf16.mxu0 %v2379_v43  ;;  %2396 = vmatprep.subr.bf16.mxu1 %v2395_v35 }
 0x5ed   : >> { %2382 = vmatpush1.bf16.msra.mxu0 %v2381_v59  ;;  %2398 = vmatpush1.bf16.msra.mxu1 %v2397_v42 }
 0x5ee   : >> { %v1886_v23 = vpop.permute.xlu0 %1885  ;;  %v1888_v30 = vpop.permute.xlu1 %1887 }
 0x5ef   : >> { %v1889_v33 = vsel %vm678_vm7, %v1886_v23, %v1888_v30  ;;  %v1890_v8 = vsel %vm678_vm7, %v1884_v39, %v1886_v23  ;;  %v1892_v61 = vsel %vm678_vm7, %v1888_v30, %v1882_v22 }
 0x5f0   : >> { %1954 = vmatprep.subr.mxu0 %v1890_v8  ;;  %2025 = vmatprep.subr.mxu1 %v1892_v61 }
 0x5f1   : >> { %1955 = vmatpush1.msra.mxu0 %v1891_v48  ;;  %2026 = vmatpush1.msra.mxu1 %v1889_v33 }
 0x5f2   : >> { %2266 = vmatmul.mubr.msk.f32.vlgmr.msra.gmra.mrb[6].mxu0 %vm919_vm8, %v1898_v31  ;;  %2267 = vmatmul.mubr.msk.f32.vlgmr.msra.gmra.mrb[6].mxu1 %vm919_vm8, %v1898_v31 }
 0x5ff   : >> { %v2085_v9 = vpop.permute.xlu0 %2084 }
 0x600   : >> { %v2090_v60 = vrot.slane %v2085_v9, %v2980_v3 }
 0x6c5   : >> { %v2004_v18 = vpop.f32.mrb[6].mxu0  ;;  %v2075_v1 = vpop.f32.mrb[6].mxu1 }
 0x6c6   : >> { %v2091_v57 = vadd.f32 %v2090_v60, %v2004_v18  ;;  %v2093_v55 = vadd.f32 %v2090_v60, %v2075_v1  ;;  %v2006_v4 = vpop.f32.mrb[7].mxu0  ;;  %v2077_v10 = vpop.f32.mrb[7].mxu1 }
 0x6c7   : >> { %v2092_v51 = vadd.f32 %v2090_v60, %v2006_v4  ;;  %v2094_v24 = vadd.f32 %v2090_v60, %v2077_v10 }
 0x6c8   : >> { %v2095_v29 = vmax.f32 %v2091_v57, 0.0  ;;  %v2097_v34 = vmax.f32 %v2093_v55, 0.0 }
 0x6c9   : >> { %v2096_v44 = vmax.f32 %v2092_v51, 0.0  ;;  %v2098_v19 = vmax.f32 %v2094_v24, 0.0 }
 0x6ca   : >> { %v2099_v8 = vmul.f32 %v2095_v29, %v3199_v36   ;;  %v2101_v10 = vmul.f32 %v2097_v34, %v3346_v49   ;;  %332 = sbr.rel (!%p330_p4) target bundleno = 18 (0x12), region = 99 }
 0x6cb   : >> { %v2100_v9 = vmul.f32 %v2096_v44, %v3204_v37   ;;  %v2102_v11 = vmul.f32 %v2098_v19, %v3351_v38  }
 0x6cc   : >> { %v2108_v32 = vrot.slane %v2099_v8, %v2980_v3  ;;  %v2116_v7 = vrot.slane %v2101_v10, %v2980_v3 }
 0x6cd   : >> { %v2112_v20 = vrot.slane %v2100_v9, %v2980_v3  ;;  %v2120_v54 = vrot.slane %v2102_v11, %v2980_v3 }
 0x6ce   : >> { %v2123_v28 = vsel %vm2104_vm0, %v2108_v32, %v2862_v15   ;;  %v2125_v36 = vsel %vm2104_vm0, %v2116_v7, %v2854_v13  }
 0x6cf   : >> { %v2124_v49 = vsel %vm2104_vm0, %v2112_v20, %v2858_v14   ;;  %v2126_v53 = vsel %vm2104_vm0, %v2120_v54, %v2850_v12   ;;  %v3809_v13 = vmov %v2125_v36  ;;  %v3811_v15 = vmov %v2123_v28  ;;  %2127 = vst [vmem:[%s2991_s16] sm:$0xff] (%p330_p4), %v2123_v28  ;;  %2129 = vst [vmem:[%s2991_s16 + $0x10] sm:$0xff] (%p330_p4), %v2125_v36 }
 0x6d0   : >> { %v3808_v12 = vmov %v2126_v53  ;;  %v3810_v14 = vmov %v2124_v49  ;;  %2128 = vst [vmem:[%s2991_s16 + $0x8] sm:$0xff] (%p330_p4), %v2124_v49  ;;  %2130 = vst [vmem:[%s2991_s16 + $0x18] sm:$0xff] (%p330_p4), %v2126_v53 }
 0x6d1 PF: > { %s18_s27 = sadd.s32 1, %s2846_s27  }
 0x6d2   : > { %p15_p5 = scmp.ge.s32.totalorder %s18_s27, 4  }
 0x6d4   :  { %17 = sbr.rel (!%p15_p5) target bundleno = 1 (0x1), region = 110 }

</bundles_post_ra>
